<compile_context>
chip_gen: v7x
topology: tpu7x:2x2x1
jax: 0.10.0
libtpu: 0.0.40
codegen_flags: <defaults>
</compile_context>

<pallas_src>
import jax
import jax.numpy as jnp
from jax import lax
from jax.experimental import pallas as pl
from jax.experimental.pallas import tpu as pltpu


def get_padding(kernel_size, dilation=1):
    return int((kernel_size * dilation - dilation) / 2)


# ----------------------------------------------------------------------------
# Fused GeneratorBlock kernel
# ----------------------------------------------------------------------------
def _make_generator_kernel(cfg):
    (C, T, ch2, T_up, stride, Tq, PLu, PRu, phase_offs, res_struct, slope) = cfg

    def lrelu(v):
        return jnp.where(v >= 0, v, slope * v)

    def pad_time(v, left, right):
        rows = v.shape[0]
        parts = []
        if left > 0:
            parts.append(jnp.zeros((rows, left), jnp.float32))
        parts.append(v)
        if right > 0:
            parts.append(jnp.zeros((rows, right), jnp.float32))
        if len(parts) == 1:
            return v
        return jnp.concatenate(parts, axis=1)

    def kernel(*refs):
        x_ref, out_ref = refs[0], refs[-1]
        it = iter(refs[1:-1])

        # ------------------------------------------------------------------
        # leaky_relu + polyphase ConvTranspose1d (upsample)
        # ------------------------------------------------------------------
        x = x_ref[0].astype(jnp.float32)            # (C, T)
        xa = lrelu(x)
        xp = pad_time(xa, PLu, PRu)                 # (C, T + PLu + PRu)

        q_idx = lax.broadcasted_iota(jnp.int32, (Tq, T_up), 0)
        n_idx = lax.broadcasted_iota(jnp.int32, (Tq, T_up), 1)

        y = jnp.zeros((ch2, T_up), jnp.float32)
        for r, offs in enumerate(phase_offs):
            wph = next(it)[...].astype(jnp.float32)              # (ch2, len(offs)*C)
            cols = jnp.concatenate(
                [xp[:, PLu + o: PLu + o + Tq] for o in offs], axis=0)
            y_r = jnp.dot(wph, cols, preferred_element_type=jnp.float32)  # (ch2, Tq)
            # interleave: out[:, q*stride + r] = y_r[:, q]  (static 0/1 scatter matmul)
            scat = (n_idx == q_idx * stride + r).astype(jnp.float32)      # (Tq, T_up)
            y = y + jnp.dot(y_r, scat, preferred_element_type=jnp.float32)
        y = y + next(it)[...].astype(jnp.float32)                # upsample bias (ch2, 1)

        # ------------------------------------------------------------------
        # 'same'-padded dilated conv as ONE im2col matmul
        # ------------------------------------------------------------------
        def same_conv(xv, wp, bias, K, d):
            p = get_padding(K, d)
            xq = pad_time(xv, p, p)
            cols = jnp.concatenate(
                [xq[:, k * d: k * d + T_up] for k in range(K)], axis=0)   # (K*ch2, T_up)
            return jnp.dot(wp, cols, preferred_element_type=jnp.float32) + bias

        # ------------------------------------------------------------------
        # multi-receptive-field ResBlocks, activations stay resident in VMEM
        # ------------------------------------------------------------------
        sum_x = None
        for rk, dils in res_struct:
            h = y
            for d in dils:
                w1 = next(it)[...].astype(jnp.float32)
                b1 = next(it)[...].astype(jnp.float32)
                w2 = next(it)[...].astype(jnp.float32)
                b2 = next(it)[...].astype(jnp.float32)
                xt = same_conv(lrelu(h), w1, b1, rk, d)
                xt = same_conv(lrelu(xt), w2, b2, rk, 1)
                h = xt + h                                       # fused residual add
            sum_x = h if sum_x is None else sum_x + h
        out = sum_x * (1.0 / len(res_struct))
        out_ref[0] = out.astype(out_ref.dtype)

    return kernel


# ----------------------------------------------------------------------------
# One-time parameter packing (PyTorch layout -> MXU-friendly matrices)
# ----------------------------------------------------------------------------
def pack_generator_params(params, channels, kernel_size, resnet_kernel, resnet_dilation):
    ch2 = channels // 2
    K = kernel_size
    stride = K // 2
    padding = (K - K // 2) // 2
    pad_l = K - 1 - padding

    up_w, up_b = params["upsample"]                              # (C, ch2, K), (ch2,)
    # equivalent regular-conv kernel of the transposed conv:
    #   w_conv[co, ci, k] = up_w[ci, co, K-1-k]
    w_conv = jnp.flip(jnp.transpose(up_w, (1, 0, 2)), axis=2)

    packed = []
    phase_offs = []
    for r in range(stride):
        k0 = (pad_l - r) % stride
        taps = list(range(k0, K, stride))
        offs = tuple((k + r - pad_l) // stride for k in taps)
        phase_offs.append(offs)
        packed.append(jnp.concatenate([w_conv[:, :, k] for k in taps], axis=1))
    packed.append(up_b.reshape(ch2, 1))

    res_struct = []
    for rk, dils, block in zip(resnet_kernel, resnet_dilation, params["mfr"]):
        res_struct.append((rk, tuple(dils)))
        for (w1, b1, w2, b2) in block:
            packed.append(jnp.transpose(w1, (0, 2, 1)).reshape(ch2, rk * ch2))
            packed.append(b1.reshape(ch2, 1))
            packed.append(jnp.transpose(w2, (0, 2, 1)).reshape(ch2, rk * ch2))
            packed.append(b2.reshape(ch2, 1))

    meta = dict(stride=stride, padding=padding, K=K,
                phase_offs=tuple(phase_offs), res_struct=tuple(res_struct))
    return packed, meta


# ----------------------------------------------------------------------------
# Forward wrapper: one pallas_call for the whole GeneratorBlock
# ----------------------------------------------------------------------------
def generator_block_pallas(x, packed, meta, slope=0.1):
    B, C, T = x.shape
    ch2 = C // 2
    stride, padding, K = meta["stride"], meta["padding"], meta["K"]
    phase_offs = meta["phase_offs"]
    res_struct = meta["res_struct"]

    T_up = (T - 1) * stride - 2 * padding + K
    Tq = (T_up + stride - 1) // stride
    min_off = min(min(o) for o in phase_offs)
    max_off = max(max(o) for o in phase_offs)
    PLu = max(0, -min_off)
    PRu = max(0, max_off + Tq - T)

    cfg = (C, T, ch2, T_up, stride, Tq, PLu, PRu, phase_offs, res_struct, slope)
    kernel = _make_generator_kernel(cfg)

    in_specs = [pl.BlockSpec((1, C, T), lambda i: (i, 0, 0))]
    for w in packed:
        in_specs.append(pl.BlockSpec(w.shape, lambda i: (0, 0)))

    return pl.pallas_call(
        kernel,
        out_shape=jax.ShapeDtypeStruct((B, ch2, T_up), x.dtype),
        grid=(B,),
        in_specs=in_specs,
        out_specs=pl.BlockSpec((1, ch2, T_up), lambda i: (i, 0, 0)),
        compiler_params=pltpu.CompilerParams(dimension_semantics=("parallel",)),
    )(x, *packed)


# ----------------------------------------------------------------------------
# Pure-JAX reference (for verification only)
# ----------------------------------------------------------------------------
def _lrelu(x, s):
    return jnp.where(x >= 0, x, s * x)


def _conv1d_ref(x, w, b, dilation, padding):
    y = lax.conv_general_dilated(x, w, window_strides=(1,), padding=[(padding, padding)],
                                 rhs_dilation=(dilation,),
                                 dimension_numbers=("NCH", "OIH", "NCH"))
    return y + b[None, :, None]


def _conv_transpose1d_ref(x, w, b, stride, padding):
    K = w.shape[2]
    w_conv = jnp.flip(jnp.transpose(w, (1, 0, 2)), axis=2)
    y = lax.conv_general_dilated(x, w_conv, window_strides=(1,),
                                 padding=[(K - 1 - padding, K - 1 - padding)],
                                 lhs_dilation=(stride,),
                                 dimension_numbers=("NCH", "OIH", "NCH"))
    return y + b[None, :, None]


def generator_block_ref(x, params, kernel_size, resnet_kernel, resnet_dilation, slope=0.1):
    up_w, up_b = params["upsample"]
    stride = kernel_size // 2
    padding = (kernel_size - kernel_size // 2) // 2
    x = _conv_transpose1d_ref(_lrelu(x, slope), up_w, up_b, stride, padding)
    sum_x = None
    for rk, rd, rb_params in zip(resnet_kernel, resnet_dilation, params["mfr"]):
        h = x
        for d, (w1, b1, w2, b2) in zip(rd, rb_params):
            xt = _conv1d_ref(_lrelu(h, slope), w1, b1, d, get_padding(rk, d))
            xt = _conv1d_ref(_lrelu(xt, slope), w2, b2, 1, get_padding(rk, 1))
            h = xt + h
        sum_x = h if sum_x is None else sum_x + h
    return sum_x / len(resnet_kernel)


# ----------------------------------------------------------------------------
# Deterministic parameter init (weight_norm reparametrization: w = g * v/||v||, dim=0)
# ----------------------------------------------------------------------------
def _weight_norm(v, g):
    norm = jnp.sqrt(jnp.sum(v * v, axis=tuple(range(1, v.ndim)), keepdims=True))
    return g.reshape((-1,) + (1,) * (v.ndim - 1)) * v / norm


def init_params(key, channels, kernel_size, resnet_kernel, resnet_dilation):
    ch2 = channels // 2
    keys = iter(jax.random.split(key, 512))

    def wn_conv(cout, cin, k):
        v = jax.random.normal(next(keys), (cout, cin, k), jnp.float32) * 0.1
        g = jax.random.uniform(next(keys), (cout,), jnp.float32, 0.5, 1.5)
        b = jax.random.normal(next(keys), (cout,), jnp.float32) * 0.05
        return _weight_norm(v, g), b

    def wn_conv_t(cin, cout, k):
        v = jax.random.normal(next(keys), (cin, cout, k), jnp.float32) * 0.1
        g = jax.random.uniform(next(keys), (cin,), jnp.float32, 0.5, 1.5)
        b = jax.random.normal(next(keys), (cout,), jnp.float32) * 0.05
        return _weight_norm(v, g), b

    params = {"upsample": wn_conv_t(channels, ch2, kernel_size), "mfr": []}
    for rk, rd in zip(resnet_kernel, resnet_dilation):
        block = []
        for _ in rd:
            w1, b1 = wn_conv(ch2, ch2, rk)
            w2, b2 = wn_conv(ch2, ch2, rk)
            block.append((w1, b1, w2, b2))
        params["mfr"].append(block)
    return params


# ----------------------------------------------------------------------------
if __name__ == "__main__":
    channels = 16            # upsample halves this -> 8 (matches 8 sublanes)
    kernel_size = 4          # stride = 2, padding = 1
    resnet_kernel = [3, 5]
    resnet_dilation = [[1, 3], [1, 3]]
    B, T = 2, 64             # T chosen so upsampled length = 128 (lane-dense output)

    key = jax.random.PRNGKey(0)
    k_x, k_p = jax.random.split(key)
    x = jax.random.normal(k_x, (B, channels, T), jnp.float32)
    params = init_params(k_p, channels, kernel_size, resnet_kernel, resnet_dilation)

    # one-time packing of weights into MXU-friendly layout (outside the forward path)
    packed, meta = pack_generator_params(params, channels, kernel_size,
                                         resnet_kernel, resnet_dilation)
    packed = [jax.block_until_ready(w) for w in packed]

    y = generator_block_pallas(x, packed, meta)
    y = jax.block_until_ready(y)

    y_ref = generator_block_ref(x, params, kernel_size, resnet_kernel, resnet_dilation)
    stride = kernel_size // 2
    padding = (kernel_size - kernel_size // 2) // 2
    T_up = (T - 1) * stride - 2 * padding + kernel_size
    assert y.shape == y_ref.shape == (B, channels // 2, T_up)
    assert jnp.allclose(y, y_ref, atol=1e-4, rtol=1e-4), float(jnp.max(jnp.abs(y - y_ref)))

    print("KERNEL_OK")
</pallas_src>

<mosaic_0001>
module attributes {stable_mosaic.version = 11 : i64} {
  func.func @kernel(%arg0: i32, %arg1: memref<1x16x64xf32, #tpu.memory_space<vmem>>, %arg2: memref<8x32xf32, #tpu.memory_space<vmem>>, %arg3: memref<8x32xf32, #tpu.memory_space<vmem>>, %arg4: memref<8x1xf32, #tpu.memory_space<vmem>>, %arg5: memref<8x24xf32, #tpu.memory_space<vmem>>, %arg6: memref<8x1xf32, #tpu.memory_space<vmem>>, %arg7: memref<8x24xf32, #tpu.memory_space<vmem>>, %arg8: memref<8x1xf32, #tpu.memory_space<vmem>>, %arg9: memref<8x24xf32, #tpu.memory_space<vmem>>, %arg10: memref<8x1xf32, #tpu.memory_space<vmem>>, %arg11: memref<8x24xf32, #tpu.memory_space<vmem>>, %arg12: memref<8x1xf32, #tpu.memory_space<vmem>>, %arg13: memref<8x40xf32, #tpu.memory_space<vmem>>, %arg14: memref<8x1xf32, #tpu.memory_space<vmem>>, %arg15: memref<8x40xf32, #tpu.memory_space<vmem>>, %arg16: memref<8x1xf32, #tpu.memory_space<vmem>>, %arg17: memref<8x40xf32, #tpu.memory_space<vmem>>, %arg18: memref<8x1xf32, #tpu.memory_space<vmem>>, %arg19: memref<8x40xf32, #tpu.memory_space<vmem>>, %arg20: memref<8x1xf32, #tpu.memory_space<vmem>>, %arg21: memref<1x8x128xf32, #tpu.memory_space<vmem>>) attributes {dimension_semantics = [#tpu.dimension_semantics<parallel>], iteration_bounds = array<i64: 2>, scalar_prefetch = 0 : i64, scratch_operands = 0 : i64, tpu.core_type = #tpu.core_type<tc>, window_params = [{transform_indices = @transform_0, window_bounds = array<i64: 1, 16, 64>}, {pipeline_mode = #tpu.pipeline_mode<synchronous>, transform_indices = @transform_1, window_bounds = array<i64: 8, 32>}, {pipeline_mode = #tpu.pipeline_mode<synchronous>, transform_indices = @transform_2, window_bounds = array<i64: 8, 32>}, {pipeline_mode = #tpu.pipeline_mode<synchronous>, transform_indices = @transform_3, window_bounds = array<i64: 8, 1>}, {pipeline_mode = #tpu.pipeline_mode<synchronous>, transform_indices = @transform_4, window_bounds = array<i64: 8, 24>}, {pipeline_mode = #tpu.pipeline_mode<synchronous>, transform_indices = @transform_5, window_bounds = array<i64: 8, 1>}, {pipeline_mode = #tpu.pipeline_mode<synchronous>, transform_indices = @transform_6, window_bounds = array<i64: 8, 24>}, {pipeline_mode = #tpu.pipeline_mode<synchronous>, transform_indices = @transform_7, window_bounds = array<i64: 8, 1>}, {pipeline_mode = #tpu.pipeline_mode<synchronous>, transform_indices = @transform_8, window_bounds = array<i64: 8, 24>}, {pipeline_mode = #tpu.pipeline_mode<synchronous>, transform_indices = @transform_9, window_bounds = array<i64: 8, 1>}, {pipeline_mode = #tpu.pipeline_mode<synchronous>, transform_indices = @transform_10, window_bounds = array<i64: 8, 24>}, {pipeline_mode = #tpu.pipeline_mode<synchronous>, transform_indices = @transform_11, window_bounds = array<i64: 8, 1>}, {pipeline_mode = #tpu.pipeline_mode<synchronous>, transform_indices = @transform_12, window_bounds = array<i64: 8, 40>}, {pipeline_mode = #tpu.pipeline_mode<synchronous>, transform_indices = @transform_13, window_bounds = array<i64: 8, 1>}, {pipeline_mode = #tpu.pipeline_mode<synchronous>, transform_indices = @transform_14, window_bounds = array<i64: 8, 40>}, {pipeline_mode = #tpu.pipeline_mode<synchronous>, transform_indices = @transform_15, window_bounds = array<i64: 8, 1>}, {pipeline_mode = #tpu.pipeline_mode<synchronous>, transform_indices = @transform_16, window_bounds = array<i64: 8, 40>}, {pipeline_mode = #tpu.pipeline_mode<synchronous>, transform_indices = @transform_17, window_bounds = array<i64: 8, 1>}, {pipeline_mode = #tpu.pipeline_mode<synchronous>, transform_indices = @transform_18, window_bounds = array<i64: 8, 40>}, {pipeline_mode = #tpu.pipeline_mode<synchronous>, transform_indices = @transform_19, window_bounds = array<i64: 8, 1>}, {transform_indices = @transform_20, window_bounds = array<i64: 1, 8, 128>}]} {
    %c0 = arith.constant 0 : index
    %c0_0 = arith.constant 0 : index
    %c0_1 = arith.constant 0 : index
    %0 = vector.load %arg1[%c0, %c0_0, %c0_1] : memref<1x16x64xf32, #tpu.memory_space<vmem>>, vector<1x16x64xf32>
    %1 = vector.shape_cast %0 : vector<1x16x64xf32> to vector<16x64xf32>
    %cst = arith.constant 0.000000e+00 : f32
    %2 = vector.broadcast %cst : f32 to vector<16x64xf32>
    %3 = arith.cmpf oge, %1, %2 : vector<16x64xf32>
    %cst_2 = arith.constant 1.000000e-01 : f32
    %4 = vector.broadcast %cst_2 : f32 to vector<16x64xf32>
    %5 = arith.mulf %4, %1 : vector<16x64xf32>
    %6 = arith.select %3, %1, %5 : vector<16x64xi1>, vector<16x64xf32>
    %cst_3 = arith.constant 0.000000e+00 : f32
    %7 = vector.broadcast %cst_3 : f32 to vector<16x1xf32>
    %cst_4 = arith.constant 0.000000e+00 : f32
    %8 = vector.broadcast %cst_4 : f32 to vector<16x1xf32>
    %9 = tpu.concatenate %7, %6, %8 in 1 : vector<16x1xf32>, vector<16x64xf32>, vector<16x1xf32> -> vector<16x66xf32>
    %10 = tpu.iota {dimensions = array<i32: 0>} : vector<64x128xi32>
    %11 = tpu.iota {dimensions = array<i32: 1>} : vector<64x128xi32>
    %cst_5 = arith.constant 0.000000e+00 : f32
    %12 = vector.broadcast %cst_5 : f32 to vector<8x128xf32>
    %c0_6 = arith.constant 0 : index
    %c0_7 = arith.constant 0 : index
    %13 = vector.load %arg2[%c0_6, %c0_7] : memref<8x32xf32, #tpu.memory_space<vmem>>, vector<8x32xf32>
    %14 = vector.extract_strided_slice %9 {offsets = [0, 0], sizes = [16, 64], strides = [1, 1]} : vector<16x66xf32> to vector<16x64xf32>
    %15 = vector.extract_strided_slice %9 {offsets = [0, 1], sizes = [16, 64], strides = [1, 1]} : vector<16x66xf32> to vector<16x64xf32>
    %16 = tpu.concatenate %14, %15 in 0 : vector<16x64xf32>, vector<16x64xf32> -> vector<32x64xf32>
    %cst_8 = arith.constant dense<0.000000e+00> : vector<8x64xf32>
    %17 = tpu.matmul %13, %16, %cst_8 {dimension_numbers = #tpu.dot_dimension_numbers<[1], [0], [0], [1], [0, 0, 1, 1], [], []>} : vector<8x32xf32>, vector<32x64xf32>, vector<8x64xf32> -> vector<8x64xf32>
    %c2_i32 = arith.constant 2 : i32
    %18 = vector.broadcast %c2_i32 : i32 to vector<64x128xi32>
    %19 = arith.muli %10, %18 : vector<64x128xi32>
    %c0_i32 = arith.constant 0 : i32
    %20 = vector.broadcast %c0_i32 : i32 to vector<64x128xi32>
    %21 = arith.addi %19, %20 : vector<64x128xi32>
    %22 = arith.cmpi eq, %11, %21 : vector<64x128xi32>
    %23 = arith.extui %22 : vector<64x128xi1> to vector<64x128xi32>
    %24 = arith.sitofp %23 : vector<64x128xi32> to vector<64x128xf32>
    %cst_9 = arith.constant dense<0.000000e+00> : vector<8x128xf32>
    %25 = tpu.matmul %17, %24, %cst_9 {dimension_numbers = #tpu.dot_dimension_numbers<[1], [0], [0], [1], [0, 0, 1, 1], [], []>} : vector<8x64xf32>, vector<64x128xf32>, vector<8x128xf32> -> vector<8x128xf32>
    %26 = arith.addf %12, %25 : vector<8x128xf32>
    %c0_10 = arith.constant 0 : index
    %c0_11 = arith.constant 0 : index
    %27 = vector.load %arg3[%c0_10, %c0_11] : memref<8x32xf32, #tpu.memory_space<vmem>>, vector<8x32xf32>
    %28 = vector.extract_strided_slice %9 {offsets = [0, 1], sizes = [16, 64], strides = [1, 1]} : vector<16x66xf32> to vector<16x64xf32>
    %29 = vector.extract_strided_slice %9 {offsets = [0, 2], sizes = [16, 64], strides = [1, 1]} : vector<16x66xf32> to vector<16x64xf32>
    %30 = tpu.concatenate %28, %29 in 0 : vector<16x64xf32>, vector<16x64xf32> -> vector<32x64xf32>
    %cst_12 = arith.constant dense<0.000000e+00> : vector<8x64xf32>
    %31 = tpu.matmul %27, %30, %cst_12 {dimension_numbers = #tpu.dot_dimension_numbers<[1], [0], [0], [1], [0, 0, 1, 1], [], []>} : vector<8x32xf32>, vector<32x64xf32>, vector<8x64xf32> -> vector<8x64xf32>
    %c2_i32_13 = arith.constant 2 : i32
    %32 = vector.broadcast %c2_i32_13 : i32 to vector<64x128xi32>
    %33 = arith.muli %10, %32 : vector<64x128xi32>
    %c1_i32 = arith.constant 1 : i32
    %34 = vector.broadcast %c1_i32 : i32 to vector<64x128xi32>
    %35 = arith.addi %33, %34 : vector<64x128xi32>
    %36 = arith.cmpi eq, %11, %35 : vector<64x128xi32>
    %37 = arith.extui %36 : vector<64x128xi1> to vector<64x128xi32>
    %38 = arith.sitofp %37 : vector<64x128xi32> to vector<64x128xf32>
    %cst_14 = arith.constant dense<0.000000e+00> : vector<8x128xf32>
    %39 = tpu.matmul %31, %38, %cst_14 {dimension_numbers = #tpu.dot_dimension_numbers<[1], [0], [0], [1], [0, 0, 1, 1], [], []>} : vector<8x64xf32>, vector<64x128xf32>, vector<8x128xf32> -> vector<8x128xf32>
    %40 = arith.addf %26, %39 : vector<8x128xf32>
    %c0_15 = arith.constant 0 : index
    %c0_16 = arith.constant 0 : index
    %41 = vector.load %arg4[%c0_15, %c0_16] : memref<8x1xf32, #tpu.memory_space<vmem>>, vector<8x1xf32>
    %42 = vector.broadcast %41 : vector<8x1xf32> to vector<8x128xf32>
    %43 = arith.addf %40, %42 : vector<8x128xf32>
    %c0_17 = arith.constant 0 : index
    %c0_18 = arith.constant 0 : index
    %44 = vector.load %arg5[%c0_17, %c0_18] : memref<8x24xf32, #tpu.memory_space<vmem>>, vector<8x24xf32>
    %c0_19 = arith.constant 0 : index
    %c0_20 = arith.constant 0 : index
    %45 = vector.load %arg6[%c0_19, %c0_20] : memref<8x1xf32, #tpu.memory_space<vmem>>, vector<8x1xf32>
    %c0_21 = arith.constant 0 : index
    %c0_22 = arith.constant 0 : index
    %46 = vector.load %arg7[%c0_21, %c0_22] : memref<8x24xf32, #tpu.memory_space<vmem>>, vector<8x24xf32>
    %c0_23 = arith.constant 0 : index
    %c0_24 = arith.constant 0 : index
    %47 = vector.load %arg8[%c0_23, %c0_24] : memref<8x1xf32, #tpu.memory_space<vmem>>, vector<8x1xf32>
    %cst_25 = arith.constant 0.000000e+00 : f32
    %48 = vector.broadcast %cst_25 : f32 to vector<8x128xf32>
    %49 = arith.cmpf oge, %43, %48 : vector<8x128xf32>
    %cst_26 = arith.constant 1.000000e-01 : f32
    %50 = vector.broadcast %cst_26 : f32 to vector<8x128xf32>
    %51 = arith.mulf %50, %43 : vector<8x128xf32>
    %52 = arith.select %49, %43, %51 : vector<8x128xi1>, vector<8x128xf32>
    %cst_27 = arith.constant 0.000000e+00 : f32
    %53 = vector.broadcast %cst_27 : f32 to vector<8x1xf32>
    %cst_28 = arith.constant 0.000000e+00 : f32
    %54 = vector.broadcast %cst_28 : f32 to vector<8x1xf32>
    %55 = tpu.concatenate %53, %52, %54 in 1 : vector<8x1xf32>, vector<8x128xf32>, vector<8x1xf32> -> vector<8x130xf32>
    %56 = vector.extract_strided_slice %55 {offsets = [0, 0], sizes = [8, 128], strides = [1, 1]} : vector<8x130xf32> to vector<8x128xf32>
    %57 = vector.extract_strided_slice %55 {offsets = [0, 1], sizes = [8, 128], strides = [1, 1]} : vector<8x130xf32> to vector<8x128xf32>
    %58 = vector.extract_strided_slice %55 {offsets = [0, 2], sizes = [8, 128], strides = [1, 1]} : vector<8x130xf32> to vector<8x128xf32>
    %59 = tpu.concatenate %56, %57, %58 in 0 : vector<8x128xf32>, vector<8x128xf32>, vector<8x128xf32> -> vector<24x128xf32>
    %cst_29 = arith.constant dense<0.000000e+00> : vector<8x128xf32>
    %60 = tpu.matmul %44, %59, %cst_29 {dimension_numbers = #tpu.dot_dimension_numbers<[1], [0], [0], [1], [0, 0, 1, 1], [], []>} : vector<8x24xf32>, vector<24x128xf32>, vector<8x128xf32> -> vector<8x128xf32>
    %61 = vector.broadcast %45 : vector<8x1xf32> to vector<8x128xf32>
    %62 = arith.addf %60, %61 : vector<8x128xf32>
    %cst_30 = arith.constant 0.000000e+00 : f32
    %63 = vector.broadcast %cst_30 : f32 to vector<8x128xf32>
    %64 = arith.cmpf oge, %62, %63 : vector<8x128xf32>
    %cst_31 = arith.constant 1.000000e-01 : f32
    %65 = vector.broadcast %cst_31 : f32 to vector<8x128xf32>
    %66 = arith.mulf %65, %62 : vector<8x128xf32>
    %67 = arith.select %64, %62, %66 : vector<8x128xi1>, vector<8x128xf32>
    %cst_32 = arith.constant 0.000000e+00 : f32
    %68 = vector.broadcast %cst_32 : f32 to vector<8x1xf32>
    %cst_33 = arith.constant 0.000000e+00 : f32
    %69 = vector.broadcast %cst_33 : f32 to vector<8x1xf32>
    %70 = tpu.concatenate %68, %67, %69 in 1 : vector<8x1xf32>, vector<8x128xf32>, vector<8x1xf32> -> vector<8x130xf32>
    %71 = vector.extract_strided_slice %70 {offsets = [0, 0], sizes = [8, 128], strides = [1, 1]} : vector<8x130xf32> to vector<8x128xf32>
    %72 = vector.extract_strided_slice %70 {offsets = [0, 1], sizes = [8, 128], strides = [1, 1]} : vector<8x130xf32> to vector<8x128xf32>
    %73 = vector.extract_strided_slice %70 {offsets = [0, 2], sizes = [8, 128], strides = [1, 1]} : vector<8x130xf32> to vector<8x128xf32>
    %74 = tpu.concatenate %71, %72, %73 in 0 : vector<8x128xf32>, vector<8x128xf32>, vector<8x128xf32> -> vector<24x128xf32>
    %cst_34 = arith.constant dense<0.000000e+00> : vector<8x128xf32>
    %75 = tpu.matmul %46, %74, %cst_34 {dimension_numbers = #tpu.dot_dimension_numbers<[1], [0], [0], [1], [0, 0, 1, 1], [], []>} : vector<8x24xf32>, vector<24x128xf32>, vector<8x128xf32> -> vector<8x128xf32>
    %76 = vector.broadcast %47 : vector<8x1xf32> to vector<8x128xf32>
    %77 = arith.addf %75, %76 : vector<8x128xf32>
    %78 = arith.addf %77, %43 : vector<8x128xf32>
    %c0_35 = arith.constant 0 : index
    %c0_36 = arith.constant 0 : index
    %79 = vector.load %arg9[%c0_35, %c0_36] : memref<8x24xf32, #tpu.memory_space<vmem>>, vector<8x24xf32>
    %c0_37 = arith.constant 0 : index
    %c0_38 = arith.constant 0 : index
    %80 = vector.load %arg10[%c0_37, %c0_38] : memref<8x1xf32, #tpu.memory_space<vmem>>, vector<8x1xf32>
    %c0_39 = arith.constant 0 : index
    %c0_40 = arith.constant 0 : index
    %81 = vector.load %arg11[%c0_39, %c0_40] : memref<8x24xf32, #tpu.memory_space<vmem>>, vector<8x24xf32>
    %c0_41 = arith.constant 0 : index
    %c0_42 = arith.constant 0 : index
    %82 = vector.load %arg12[%c0_41, %c0_42] : memref<8x1xf32, #tpu.memory_space<vmem>>, vector<8x1xf32>
    %cst_43 = arith.constant 0.000000e+00 : f32
    %83 = vector.broadcast %cst_43 : f32 to vector<8x128xf32>
    %84 = arith.cmpf oge, %78, %83 : vector<8x128xf32>
    %cst_44 = arith.constant 1.000000e-01 : f32
    %85 = vector.broadcast %cst_44 : f32 to vector<8x128xf32>
    %86 = arith.mulf %85, %78 : vector<8x128xf32>
    %87 = arith.select %84, %78, %86 : vector<8x128xi1>, vector<8x128xf32>
    %cst_45 = arith.constant 0.000000e+00 : f32
    %88 = vector.broadcast %cst_45 : f32 to vector<8x3xf32>
    %cst_46 = arith.constant 0.000000e+00 : f32
    %89 = vector.broadcast %cst_46 : f32 to vector<8x3xf32>
    %90 = tpu.concatenate %88, %87, %89 in 1 : vector<8x3xf32>, vector<8x128xf32>, vector<8x3xf32> -> vector<8x134xf32>
    %91 = vector.extract_strided_slice %90 {offsets = [0, 0], sizes = [8, 128], strides = [1, 1]} : vector<8x134xf32> to vector<8x128xf32>
    %92 = vector.extract_strided_slice %90 {offsets = [0, 3], sizes = [8, 128], strides = [1, 1]} : vector<8x134xf32> to vector<8x128xf32>
    %93 = vector.extract_strided_slice %90 {offsets = [0, 6], sizes = [8, 128], strides = [1, 1]} : vector<8x134xf32> to vector<8x128xf32>
    %94 = tpu.concatenate %91, %92, %93 in 0 : vector<8x128xf32>, vector<8x128xf32>, vector<8x128xf32> -> vector<24x128xf32>
    %cst_47 = arith.constant dense<0.000000e+00> : vector<8x128xf32>
    %95 = tpu.matmul %79, %94, %cst_47 {dimension_numbers = #tpu.dot_dimension_numbers<[1], [0], [0], [1], [0, 0, 1, 1], [], []>} : vector<8x24xf32>, vector<24x128xf32>, vector<8x128xf32> -> vector<8x128xf32>
    %96 = vector.broadcast %80 : vector<8x1xf32> to vector<8x128xf32>
    %97 = arith.addf %95, %96 : vector<8x128xf32>
    %cst_48 = arith.constant 0.000000e+00 : f32
    %98 = vector.broadcast %cst_48 : f32 to vector<8x128xf32>
    %99 = arith.cmpf oge, %97, %98 : vector<8x128xf32>
    %cst_49 = arith.constant 1.000000e-01 : f32
    %100 = vector.broadcast %cst_49 : f32 to vector<8x128xf32>
    %101 = arith.mulf %100, %97 : vector<8x128xf32>
    %102 = arith.select %99, %97, %101 : vector<8x128xi1>, vector<8x128xf32>
    %cst_50 = arith.constant 0.000000e+00 : f32
    %103 = vector.broadcast %cst_50 : f32 to vector<8x1xf32>
    %cst_51 = arith.constant 0.000000e+00 : f32
    %104 = vector.broadcast %cst_51 : f32 to vector<8x1xf32>
    %105 = tpu.concatenate %103, %102, %104 in 1 : vector<8x1xf32>, vector<8x128xf32>, vector<8x1xf32> -> vector<8x130xf32>
    %106 = vector.extract_strided_slice %105 {offsets = [0, 0], sizes = [8, 128], strides = [1, 1]} : vector<8x130xf32> to vector<8x128xf32>
    %107 = vector.extract_strided_slice %105 {offsets = [0, 1], sizes = [8, 128], strides = [1, 1]} : vector<8x130xf32> to vector<8x128xf32>
    %108 = vector.extract_strided_slice %105 {offsets = [0, 2], sizes = [8, 128], strides = [1, 1]} : vector<8x130xf32> to vector<8x128xf32>
    %109 = tpu.concatenate %106, %107, %108 in 0 : vector<8x128xf32>, vector<8x128xf32>, vector<8x128xf32> -> vector<24x128xf32>
    %cst_52 = arith.constant dense<0.000000e+00> : vector<8x128xf32>
    %110 = tpu.matmul %81, %109, %cst_52 {dimension_numbers = #tpu.dot_dimension_numbers<[1], [0], [0], [1], [0, 0, 1, 1], [], []>} : vector<8x24xf32>, vector<24x128xf32>, vector<8x128xf32> -> vector<8x128xf32>
    %111 = vector.broadcast %82 : vector<8x1xf32> to vector<8x128xf32>
    %112 = arith.addf %110, %111 : vector<8x128xf32>
    %113 = arith.addf %112, %78 : vector<8x128xf32>
    %c0_53 = arith.constant 0 : index
    %c0_54 = arith.constant 0 : index
    %114 = vector.load %arg13[%c0_53, %c0_54] : memref<8x40xf32, #tpu.memory_space<vmem>>, vector<8x40xf32>
    %c0_55 = arith.constant 0 : index
    %c0_56 = arith.constant 0 : index
    %115 = vector.load %arg14[%c0_55, %c0_56] : memref<8x1xf32, #tpu.memory_space<vmem>>, vector<8x1xf32>
    %c0_57 = arith.constant 0 : index
    %c0_58 = arith.constant 0 : index
    %116 = vector.load %arg15[%c0_57, %c0_58] : memref<8x40xf32, #tpu.memory_space<vmem>>, vector<8x40xf32>
    %c0_59 = arith.constant 0 : index
    %c0_60 = arith.constant 0 : index
    %117 = vector.load %arg16[%c0_59, %c0_60] : memref<8x1xf32, #tpu.memory_space<vmem>>, vector<8x1xf32>
    %cst_61 = arith.constant 0.000000e+00 : f32
    %118 = vector.broadcast %cst_61 : f32 to vector<8x128xf32>
    %119 = arith.cmpf oge, %43, %118 : vector<8x128xf32>
    %cst_62 = arith.constant 1.000000e-01 : f32
    %120 = vector.broadcast %cst_62 : f32 to vector<8x128xf32>
    %121 = arith.mulf %120, %43 : vector<8x128xf32>
    %122 = arith.select %119, %43, %121 : vector<8x128xi1>, vector<8x128xf32>
    %cst_63 = arith.constant 0.000000e+00 : f32
    %123 = vector.broadcast %cst_63 : f32 to vector<8x2xf32>
    %cst_64 = arith.constant 0.000000e+00 : f32
    %124 = vector.broadcast %cst_64 : f32 to vector<8x2xf32>
    %125 = tpu.concatenate %123, %122, %124 in 1 : vector<8x2xf32>, vector<8x128xf32>, vector<8x2xf32> -> vector<8x132xf32>
    %126 = vector.extract_strided_slice %125 {offsets = [0, 0], sizes = [8, 128], strides = [1, 1]} : vector<8x132xf32> to vector<8x128xf32>
    %127 = vector.extract_strided_slice %125 {offsets = [0, 1], sizes = [8, 128], strides = [1, 1]} : vector<8x132xf32> to vector<8x128xf32>
    %128 = vector.extract_strided_slice %125 {offsets = [0, 2], sizes = [8, 128], strides = [1, 1]} : vector<8x132xf32> to vector<8x128xf32>
    %129 = vector.extract_strided_slice %125 {offsets = [0, 3], sizes = [8, 128], strides = [1, 1]} : vector<8x132xf32> to vector<8x128xf32>
    %130 = vector.extract_strided_slice %125 {offsets = [0, 4], sizes = [8, 128], strides = [1, 1]} : vector<8x132xf32> to vector<8x128xf32>
    %131 = tpu.concatenate %126, %127, %128, %129, %130 in 0 : vector<8x128xf32>, vector<8x128xf32>, vector<8x128xf32>, vector<8x128xf32>, vector<8x128xf32> -> vector<40x128xf32>
    %cst_65 = arith.constant dense<0.000000e+00> : vector<8x128xf32>
    %132 = tpu.matmul %114, %131, %cst_65 {dimension_numbers = #tpu.dot_dimension_numbers<[1], [0], [0], [1], [0, 0, 1, 1], [], []>} : vector<8x40xf32>, vector<40x128xf32>, vector<8x128xf32> -> vector<8x128xf32>
    %133 = vector.broadcast %115 : vector<8x1xf32> to vector<8x128xf32>
    %134 = arith.addf %132, %133 : vector<8x128xf32>
    %cst_66 = arith.constant 0.000000e+00 : f32
    %135 = vector.broadcast %cst_66 : f32 to vector<8x128xf32>
    %136 = arith.cmpf oge, %134, %135 : vector<8x128xf32>
    %cst_67 = arith.constant 1.000000e-01 : f32
    %137 = vector.broadcast %cst_67 : f32 to vector<8x128xf32>
    %138 = arith.mulf %137, %134 : vector<8x128xf32>
    %139 = arith.select %136, %134, %138 : vector<8x128xi1>, vector<8x128xf32>
    %cst_68 = arith.constant 0.000000e+00 : f32
    %140 = vector.broadcast %cst_68 : f32 to vector<8x2xf32>
    %cst_69 = arith.constant 0.000000e+00 : f32
    %141 = vector.broadcast %cst_69 : f32 to vector<8x2xf32>
    %142 = tpu.concatenate %140, %139, %141 in 1 : vector<8x2xf32>, vector<8x128xf32>, vector<8x2xf32> -> vector<8x132xf32>
    %143 = vector.extract_strided_slice %142 {offsets = [0, 0], sizes = [8, 128], strides = [1, 1]} : vector<8x132xf32> to vector<8x128xf32>
    %144 = vector.extract_strided_slice %142 {offsets = [0, 1], sizes = [8, 128], strides = [1, 1]} : vector<8x132xf32> to vector<8x128xf32>
    %145 = vector.extract_strided_slice %142 {offsets = [0, 2], sizes = [8, 128], strides = [1, 1]} : vector<8x132xf32> to vector<8x128xf32>
    %146 = vector.extract_strided_slice %142 {offsets = [0, 3], sizes = [8, 128], strides = [1, 1]} : vector<8x132xf32> to vector<8x128xf32>
    %147 = vector.extract_strided_slice %142 {offsets = [0, 4], sizes = [8, 128], strides = [1, 1]} : vector<8x132xf32> to vector<8x128xf32>
    %148 = tpu.concatenate %143, %144, %145, %146, %147 in 0 : vector<8x128xf32>, vector<8x128xf32>, vector<8x128xf32>, vector<8x128xf32>, vector<8x128xf32> -> vector<40x128xf32>
    %cst_70 = arith.constant dense<0.000000e+00> : vector<8x128xf32>
    %149 = tpu.matmul %116, %148, %cst_70 {dimension_numbers = #tpu.dot_dimension_numbers<[1], [0], [0], [1], [0, 0, 1, 1], [], []>} : vector<8x40xf32>, vector<40x128xf32>, vector<8x128xf32> -> vector<8x128xf32>
    %150 = vector.broadcast %117 : vector<8x1xf32> to vector<8x128xf32>
    %151 = arith.addf %149, %150 : vector<8x128xf32>
    %152 = arith.addf %151, %43 : vector<8x128xf32>
    %c0_71 = arith.constant 0 : index
    %c0_72 = arith.constant 0 : index
    %153 = vector.load %arg17[%c0_71, %c0_72] : memref<8x40xf32, #tpu.memory_space<vmem>>, vector<8x40xf32>
    %c0_73 = arith.constant 0 : index
    %c0_74 = arith.constant 0 : index
    %154 = vector.load %arg18[%c0_73, %c0_74] : memref<8x1xf32, #tpu.memory_space<vmem>>, vector<8x1xf32>
    %c0_75 = arith.constant 0 : index
    %c0_76 = arith.constant 0 : index
    %155 = vector.load %arg19[%c0_75, %c0_76] : memref<8x40xf32, #tpu.memory_space<vmem>>, vector<8x40xf32>
    %c0_77 = arith.constant 0 : index
    %c0_78 = arith.constant 0 : index
    %156 = vector.load %arg20[%c0_77, %c0_78] : memref<8x1xf32, #tpu.memory_space<vmem>>, vector<8x1xf32>
    %cst_79 = arith.constant 0.000000e+00 : f32
    %157 = vector.broadcast %cst_79 : f32 to vector<8x128xf32>
    %158 = arith.cmpf oge, %152, %157 : vector<8x128xf32>
    %cst_80 = arith.constant 1.000000e-01 : f32
    %159 = vector.broadcast %cst_80 : f32 to vector<8x128xf32>
    %160 = arith.mulf %159, %152 : vector<8x128xf32>
    %161 = arith.select %158, %152, %160 : vector<8x128xi1>, vector<8x128xf32>
    %cst_81 = arith.constant 0.000000e+00 : f32
    %162 = vector.broadcast %cst_81 : f32 to vector<8x6xf32>
    %cst_82 = arith.constant 0.000000e+00 : f32
    %163 = vector.broadcast %cst_82 : f32 to vector<8x6xf32>
    %164 = tpu.concatenate %162, %161, %163 in 1 : vector<8x6xf32>, vector<8x128xf32>, vector<8x6xf32> -> vector<8x140xf32>
    %165 = vector.extract_strided_slice %164 {offsets = [0, 0], sizes = [8, 128], strides = [1, 1]} : vector<8x140xf32> to vector<8x128xf32>
    %166 = vector.extract_strided_slice %164 {offsets = [0, 3], sizes = [8, 128], strides = [1, 1]} : vector<8x140xf32> to vector<8x128xf32>
    %167 = vector.extract_strided_slice %164 {offsets = [0, 6], sizes = [8, 128], strides = [1, 1]} : vector<8x140xf32> to vector<8x128xf32>
    %168 = vector.extract_strided_slice %164 {offsets = [0, 9], sizes = [8, 128], strides = [1, 1]} : vector<8x140xf32> to vector<8x128xf32>
    %169 = vector.extract_strided_slice %164 {offsets = [0, 12], sizes = [8, 128], strides = [1, 1]} : vector<8x140xf32> to vector<8x128xf32>
    %170 = tpu.concatenate %165, %166, %167, %168, %169 in 0 : vector<8x128xf32>, vector<8x128xf32>, vector<8x128xf32>, vector<8x128xf32>, vector<8x128xf32> -> vector<40x128xf32>
    %cst_83 = arith.constant dense<0.000000e+00> : vector<8x128xf32>
    %171 = tpu.matmul %153, %170, %cst_83 {dimension_numbers = #tpu.dot_dimension_numbers<[1], [0], [0], [1], [0, 0, 1, 1], [], []>} : vector<8x40xf32>, vector<40x128xf32>, vector<8x128xf32> -> vector<8x128xf32>
    %172 = vector.broadcast %154 : vector<8x1xf32> to vector<8x128xf32>
    %173 = arith.addf %171, %172 : vector<8x128xf32>
    %cst_84 = arith.constant 0.000000e+00 : f32
    %174 = vector.broadcast %cst_84 : f32 to vector<8x128xf32>
    %175 = arith.cmpf oge, %173, %174 : vector<8x128xf32>
    %cst_85 = arith.constant 1.000000e-01 : f32
    %176 = vector.broadcast %cst_85 : f32 to vector<8x128xf32>
    %177 = arith.mulf %176, %173 : vector<8x128xf32>
    %178 = arith.select %175, %173, %177 : vector<8x128xi1>, vector<8x128xf32>
    %cst_86 = arith.constant 0.000000e+00 : f32
    %179 = vector.broadcast %cst_86 : f32 to vector<8x2xf32>
    %cst_87 = arith.constant 0.000000e+00 : f32
    %180 = vector.broadcast %cst_87 : f32 to vector<8x2xf32>
    %181 = tpu.concatenate %179, %178, %180 in 1 : vector<8x2xf32>, vector<8x128xf32>, vector<8x2xf32> -> vector<8x132xf32>
    %182 = vector.extract_strided_slice %181 {offsets = [0, 0], sizes = [8, 128], strides = [1, 1]} : vector<8x132xf32> to vector<8x128xf32>
    %183 = vector.extract_strided_slice %181 {offsets = [0, 1], sizes = [8, 128], strides = [1, 1]} : vector<8x132xf32> to vector<8x128xf32>
    %184 = vector.extract_strided_slice %181 {offsets = [0, 2], sizes = [8, 128], strides = [1, 1]} : vector<8x132xf32> to vector<8x128xf32>
    %185 = vector.extract_strided_slice %181 {offsets = [0, 3], sizes = [8, 128], strides = [1, 1]} : vector<8x132xf32> to vector<8x128xf32>
    %186 = vector.extract_strided_slice %181 {offsets = [0, 4], sizes = [8, 128], strides = [1, 1]} : vector<8x132xf32> to vector<8x128xf32>
    %187 = tpu.concatenate %182, %183, %184, %185, %186 in 0 : vector<8x128xf32>, vector<8x128xf32>, vector<8x128xf32>, vector<8x128xf32>, vector<8x128xf32> -> vector<40x128xf32>
    %cst_88 = arith.constant dense<0.000000e+00> : vector<8x128xf32>
    %188 = tpu.matmul %155, %187, %cst_88 {dimension_numbers = #tpu.dot_dimension_numbers<[1], [0], [0], [1], [0, 0, 1, 1], [], []>} : vector<8x40xf32>, vector<40x128xf32>, vector<8x128xf32> -> vector<8x128xf32>
    %189 = vector.broadcast %156 : vector<8x1xf32> to vector<8x128xf32>
    %190 = arith.addf %188, %189 : vector<8x128xf32>
    %191 = arith.addf %190, %152 : vector<8x128xf32>
    %192 = arith.addf %113, %191 : vector<8x128xf32>
    %cst_89 = arith.constant 5.000000e-01 : f32
    %193 = vector.broadcast %cst_89 : f32 to vector<8x128xf32>
    %194 = arith.mulf %192, %193 : vector<8x128xf32>
    %c0_90 = arith.constant 0 : index
    %c0_91 = arith.constant 0 : index
    %c0_92 = arith.constant 0 : index
    %195 = vector.load %arg21[%c0_90, %c0_91, %c0_92] : memref<1x8x128xf32, #tpu.memory_space<vmem>>, vector<1x8x128xf32>
    %196 = vector.shape_cast %195 : vector<1x8x128xf32> to vector<8x128xf32>
    %197 = vector.shape_cast %194 : vector<8x128xf32> to vector<1x8x128xf32>
    tpu.vector_store %arg21[%c0_90, %c0_91, %c0_92], %197 {strides = array<i32>} : memref<1x8x128xf32, #tpu.memory_space<vmem>>, vector<1x8x128xf32>,
    return
  }
  func.func @transform_0(%arg0: i32) -> (i32, i32, i32) {
    %c0_i32 = arith.constant 0 : i32
    %c0_i32_0 = arith.constant 0 : i32
    %c0_i32_1 = arith.constant 0 : i32
    return %arg0, %c0_i32, %c0_i32_0 : i32, i32, i32
  }
  func.func @transform_1(%arg0: i32) -> (i32, i32) {
    %c0_i32 = arith.constant 0 : i32
    %c0_i32_0 = arith.constant 0 : i32
    %c0_i32_1 = arith.constant 0 : i32
    return %c0_i32, %c0_i32_0 : i32, i32
  }
  func.func @transform_2(%arg0: i32) -> (i32, i32) {
    %c0_i32 = arith.constant 0 : i32
    %c0_i32_0 = arith.constant 0 : i32
    %c0_i32_1 = arith.constant 0 : i32
    return %c0_i32, %c0_i32_0 : i32, i32
  }
  func.func @transform_3(%arg0: i32) -> (i32, i32) {
    %c0_i32 = arith.constant 0 : i32
    %c0_i32_0 = arith.constant 0 : i32
    %c0_i32_1 = arith.constant 0 : i32
    return %c0_i32, %c0_i32_0 : i32, i32
  }
  func.func @transform_4(%arg0: i32) -> (i32, i32) {
    %c0_i32 = arith.constant 0 : i32
    %c0_i32_0 = arith.constant 0 : i32
    %c0_i32_1 = arith.constant 0 : i32
    return %c0_i32, %c0_i32_0 : i32, i32
  }
  func.func @transform_5(%arg0: i32) -> (i32, i32) {
    %c0_i32 = arith.constant 0 : i32
    %c0_i32_0 = arith.constant 0 : i32
    %c0_i32_1 = arith.constant 0 : i32
    return %c0_i32, %c0_i32_0 : i32, i32
  }
  func.func @transform_6(%arg0: i32) -> (i32, i32) {
    %c0_i32 = arith.constant 0 : i32
    %c0_i32_0 = arith.constant 0 : i32
    %c0_i32_1 = arith.constant 0 : i32
    return %c0_i32, %c0_i32_0 : i32, i32
  }
  func.func @transform_7(%arg0: i32) -> (i32, i32) {
    %c0_i32 = arith.constant 0 : i32
    %c0_i32_0 = arith.constant 0 : i32
    %c0_i32_1 = arith.constant 0 : i32
    return %c0_i32, %c0_i32_0 : i32, i32
  }
  func.func @transform_8(%arg0: i32) -> (i32, i32) {
    %c0_i32 = arith.constant 0 : i32
    %c0_i32_0 = arith.constant 0 : i32
    %c0_i32_1 = arith.constant 0 : i32
    return %c0_i32, %c0_i32_0 : i32, i32
  }
  func.func @transform_9(%arg0: i32) -> (i32, i32) {
    %c0_i32 = arith.constant 0 : i32
    %c0_i32_0 = arith.constant 0 : i32
    %c0_i32_1 = arith.constant 0 : i32
    return %c0_i32, %c0_i32_0 : i32, i32
  }
  func.func @transform_10(%arg0: i32) -> (i32, i32) {
    %c0_i32 = arith.constant 0 : i32
    %c0_i32_0 = arith.constant 0 : i32
    %c0_i32_1 = arith.constant 0 : i32
    return %c0_i32, %c0_i32_0 : i32, i32
  }
  func.func @transform_11(%arg0: i32) -> (i32, i32) {
    %c0_i32 = arith.constant 0 : i32
    %c0_i32_0 = arith.constant 0 : i32
    %c0_i32_1 = arith.constant 0 : i32
    return %c0_i32, %c0_i32_0 : i32, i32
  }
  func.func @transform_12(%arg0: i32) -> (i32, i32) {
    %c0_i32 = arith.constant 0 : i32
    %c0_i32_0 = arith.constant 0 : i32
    %c0_i32_1 = arith.constant 0 : i32
    return %c0_i32, %c0_i32_0 : i32, i32
  }
  func.func @transform_13(%arg0: i32) -> (i32, i32) {
    %c0_i32 = arith.constant 0 : i32
    %c0_i32_0 = arith.constant 0 : i32
    %c0_i32_1 = arith.constant 0 : i32
    return %c0_i32, %c0_i32_0 : i32, i32
  }
  func.func @transform_14(%arg0: i32) -> (i32, i32) {
    %c0_i32 = arith.constant 0 : i32
    %c0_i32_0 = arith.constant 0 : i32
    %c0_i32_1 = arith.constant 0 : i32
    return %c0_i32, %c0_i32_0 : i32, i32
  }
  func.func @transform_15(%arg0: i32) -> (i32, i32) {
    %c0_i32 = arith.constant 0 : i32
    %c0_i32_0 = arith.constant 0 : i32
    %c0_i32_1 = arith.constant 0 : i32
    return %c0_i32, %c0_i32_0 : i32, i32
  }
  func.func @transform_16(%arg0: i32) -> (i32, i32) {
    %c0_i32 = arith.constant 0 : i32
    %c0_i32_0 = arith.constant 0 : i32
    %c0_i32_1 = arith.constant 0 : i32
    return %c0_i32, %c0_i32_0 : i32, i32
  }
  func.func @transform_17(%arg0: i32) -> (i32, i32) {
    %c0_i32 = arith.constant 0 : i32
    %c0_i32_0 = arith.constant 0 : i32
    %c0_i32_1 = arith.constant 0 : i32
    return %c0_i32, %c0_i32_0 : i32, i32
  }
  func.func @transform_18(%arg0: i32) -> (i32, i32) {
    %c0_i32 = arith.constant 0 : i32
    %c0_i32_0 = arith.constant 0 : i32
    %c0_i32_1 = arith.constant 0 : i32
    return %c0_i32, %c0_i32_0 : i32, i32
  }
  func.func @transform_19(%arg0: i32) -> (i32, i32) {
    %c0_i32 = arith.constant 0 : i32
    %c0_i32_0 = arith.constant 0 : i32
    %c0_i32_1 = arith.constant 0 : i32
    return %c0_i32, %c0_i32_0 : i32, i32
  }
  func.func @transform_20(%arg0: i32) -> (i32, i32, i32) {
    %c0_i32 = arith.constant 0 : i32
    %c0_i32_0 = arith.constant 0 : i32
    %c0_i32_1 = arith.constant 0 : i32
    return %arg0, %c0_i32, %c0_i32_0 : i32, i32, i32
  }
}

</mosaic_0001>

<bundles_post_ra>
// kernel: tpu_custom_call.1
= control target key start
LH: loop header
LB: loop body
LE: loop exit
PB: predicated region body
PF: predicated region fallthrough
CT: control target
= control target key end

     0   :  { %s3158_s0 = inlined_call_operand.vmem [shape: f32[2,16,64], index: 0, kind: input, shape index: {}]   ;;  %s3159_s1 = inlined_call_operand.vmem [shape: f32[8,32], index: 1, kind: input, shape index: {}]   ;;  %s3160_s2 = inlined_call_operand.vmem [shape: f32[8,32], index: 2, kind: input, shape index: {}]   ;;  %s3161_s3 = inlined_call_operand.vmem [shape: f32[8,1], index: 3, kind: input, shape index: {}]   ;;  %s3162_s4 = inlined_call_operand.vmem [shape: f32[8,24], index: 4, kind: input, shape index: {}]   ;;  %s3163_s5 = inlined_call_operand.vmem [shape: f32[8,1], index: 5, kind: input, shape index: {}]   ;;  %s3164_s6 = inlined_call_operand.vmem [shape: f32[8,24], index: 6, kind: input, shape index: {}]   ;;  %s3165_s7 = inlined_call_operand.vmem [shape: f32[8,1], index: 7, kind: input, shape index: {}]   ;;  %s3166_s8 = inlined_call_operand.vmem [shape: f32[8,24], index: 8, kind: input, shape index: {}]   ;;  %s3167_s9 = inlined_call_operand.vmem [shape: f32[8,1], index: 9, kind: input, shape index: {}]   ;;  %s3168_s10 = inlined_call_operand.vmem [shape: f32[8,24], index: 10, kind: input, shape index: {}]   ;;  %s3169_s11 = inlined_call_operand.vmem [shape: f32[8,1], index: 11, kind: input, shape index: {}]   ;;  %s3170_s12 = inlined_call_operand.vmem [shape: f32[8,40], index: 12, kind: input, shape index: {}]   ;;  %s3171_s13 = inlined_call_operand.vmem [shape: f32[8,1], index: 13, kind: input, shape index: {}]   ;;  %s3172_s14 = inlined_call_operand.vmem [shape: f32[8,40], index: 14, kind: input, shape index: {}]   ;;  %s3173_s15 = inlined_call_operand.vmem [shape: f32[8,1], index: 15, kind: input, shape index: {}]   ;;  %s3174_s16 = inlined_call_operand.vmem [shape: f32[8,40], index: 16, kind: input, shape index: {}]   ;;  %s3175_s17 = inlined_call_operand.vmem [shape: f32[8,1], index: 17, kind: input, shape index: {}]   ;;  %s3176_s18 = inlined_call_operand.vmem [shape: f32[8,40], index: 18, kind: input, shape index: {}]   ;;  %s3177_s19 = inlined_call_operand.vmem [shape: f32[8,1], index: 19, kind: input, shape index: {}]   ;;  %s3178_s20 = inlined_call_operand.hbm [shape: f32[2,8,128], index: 20, kind: output, shape index: {}]  }
   0x1   :  { %3193 = sst [smem:[#allocation6_spill]] %s3158_s0 }
   0x2   :  { %3194 = sst [smem:[#allocation7_spill]] %s3159_s1 }
   0x3   :  { %3195 = sst [smem:[#allocation8_spill]] %s3160_s2 }
   0x4   :  { %3196 = sst [smem:[#allocation9_spill]] %s3161_s3 }
   0x5   :  { %3197 = sst [smem:[#allocation10_spill]] %s3162_s4 }
   0x6   :  { %3198 = sst [smem:[#allocation11_spill]] %s3163_s5 }
   0x7   :  { %3199 = sst [smem:[#allocation12_spill]] %s3164_s6 }
   0x8   :  { %3200 = sst [smem:[#allocation13_spill]] %s3165_s7 }
   0x9   :  { %3201 = sst [smem:[#allocation14_spill]] %s3166_s8 }
   0xa   :  { %25 = vsyncpa [#allocation3], 0 }
   0xb   :  { %27 = vsyncpa [#allocation3 + $0x1], 0  ;;  %s2719_s1 = smov 0   ;;  %s2721_s22 = smov 0  }
   0xc   :  { %s2723_s23 = smov 0   ;;  %s2725_s24 = smov 0  }
   0xd LB: > { %s2740_s2 = sadd.s32 4294967295, %s2594_s24   ;;  %s2002_s25 = sadd.s32 4294967294, %s2594_s24   ;;  %s2594_s24 = sphi %s2725_s24, %s3256_s24   ;;  %s2590_s23 = sphi %s2723_s23, %s3255_s23   ;;  %s2586_s22 = sphi %s2721_s22, %s3254_s22   ;;  %s2582_s1 = sphi %s2719_s1, %s3253_s1  }
   0xe   : > { %s2744_s3 = sadd.s32 1, %s2594_s24   ;;  %s465_s26 = sadd.s32 1, %s2590_s23 }
   0xf   : > { %s462_s27 = ssub.s32 %s2594_s24, %s2744_s3  ;;  %p475_p0 = scmp.ne.s32.totalorder %s2590_s23, %s2586_s22 }
  0x10   : > { %p463_p1 = scmp.eq.s32.totalorder %s462_s27, 0  ;;  %p476_p2 = scmp.eq.s32.totalorder %s2740_s2, 1 }
  0x11   : > { %p481_p3 = scmp.ne.s32.totalorder %s2586_s22, %s2582_s1  ;;  %p482_p4 = scmp.eq.s32.totalorder %s2002_s25, 1 }
  0x12   : > { %s2755_s28 = scalar_select %p463_p1, %s2590_s23, %s465_s26  }
  0x13   : > { %p2757_p5 = por %p476_p2, %p475_p0  ;;  %p2761_p6 = por %p482_p4, %p481_p3 }
  0x14   : > { %3202 = sst [smem:[#allocation5_spill]] %s2755_s28  ;;  %p2005_p7 = scmp.ge.s32.totalorder %s2594_s24, 1 }
  0x15   : > { %p565_p8 = scmp.lt.s32.totalorder %s2594_s24, 3 }
  0x17   : > { %p566_p9 = pnand %p2005_p7, %p565_p8 }
  0x18   : > { %p623_p10 = scmp.lt.s32.totalorder (!%p566_p9), %s2740_s2, 1  ;;  %v2596_v0 = vmov (!%p566_p9), 0.0|0.0   ;;  %s3205_s26 = sld [smem:[#allocation6_spill]] (!%p566_p9)  ;;  %vm3179_vm2 = vcmask (!%p566_p9), 7168   ;;  %vm647_vm3 = vcmask (!%p566_p9), 531456   ;;  %vm3180_vm5 = vmmov (!%p566_p9), 0  }
  0x19   : > { %569 = sbr.rel (%p566_p9) target bundleno = 3630 (0xe2e), region = 100  ;;  %2292 = vmatprep.subr.bf16.mxu0 (!%p566_p9), %v2596_v0  ;;  %2299 = vmatprep.subr.bf16.mxu1 (!%p566_p9), %v2596_v0  ;;  %s3187_s28 = smov (!%p566_p9), 1   ;;  %vm2294_vm4 = vmpackc.low (!%p566_p9), %vm647_vm3, %vm647_vm3  ;;  %v2600_v17 = vmov (!%p566_p9), 0.0   ;;  %v650_v19 = vlaneseq (!%p566_p9)  ;;  %vm3182_vm6 = vcmask (!%p566_p9), 261120   ;;  %v2601_v49 = vmov (!%p566_p9), 1.0|1.0  }
  0x1a   : > { %2152 = vmatprep.mubr.msk.f32.mxu0 (!%p566_p9), %vm3180_vm5, %v2600_v17  ;;  %2163 = vmatprep.mubr.msk.f32.mxu1 (!%p566_p9), %vm3180_vm5, %v2600_v17  ;;  %s3206_s25 = sld [smem:[#allocation7_spill]] (!%p566_p9)  ;;  %s3232_s5 = sld [smem:[#allocation11_spill]] (!%p566_p9) }
  0x1b   : > { %v651_v22 = vshrl.u32 (!%p566_p9), %v650_v19, 7  ;;  %v2783_v23 = vand.u32 (!%p566_p9), 127, %v650_v19  ;;  %s3239_s7 = sld [smem:[#allocation13_spill]] (!%p566_p9)  ;;  %s3240_s6 = sld [smem:[#allocation12_spill]] (!%p566_p9) }
  0x1c   : > { %s3189_s21 = smov (!%p566_p9), 125   ;;  %s3241_s8 = sld [smem:[#allocation14_spill]] (!%p566_p9) }
  0x1d   : > { %v652_v25 = vadd.s32 (!%p566_p9), 8, %v651_v22  ;;  %v744_v26 = vmul.u32 (!%p566_p9), 2, %v651_v22  ;;  %v653_v27 = vadd.s32 (!%p566_p9), 16, %v651_v22  ;;  %v654_v28 = vadd.s32 (!%p566_p9), 24, %v651_v22 }
  0x1e   : > { %v655_v35 = vadd.s32 (!%p566_p9), 32, %v651_v22  ;;  %v656_v36 = vadd.s32 (!%p566_p9), 40, %v651_v22  ;;  %v657_v45 = vadd.s32 (!%p566_p9), 48, %v651_v22  ;;  %v658_v46 = vadd.s32 (!%p566_p9), 56, %v651_v22 }
  0x1f   : > { %v745_v30 = vmul.u32 (!%p566_p9), 2, %v652_v25  ;;  %vm2791_vm7 = vcmp.eq.s32.totalorder (!%p566_p9), %v2783_v23, %v744_v26  ;;  %v856_v32 = vadd.s32 (!%p566_p9), 1, %v744_v26  ;;  %v746_v33 = vmul.u32 (!%p566_p9), 2, %v653_v27 }
  0x20   : > { %s624_s30 = scalar_select %p623_p10, %s2740_s2, 1  ;;  %v661_v29 = vld [vmem:[%s3206_s25] sm:$0xff]  ;;  %v747_v34 = vmul.u32 2, %v654_v28  ;;  %v748_v43 = vmul.u32 2, %v655_v35 }
  0x21   : > { %vm2798_vm8 = vcmp.eq.s32.totalorder %v2783_v23, %v745_v30  ;;  %v857_v38 = vadd.s32 1, %v745_v30  ;;  %vm864_vm9 = vcmp.eq.s32.totalorder %v2783_v23, %v856_v32  ;;  %vm2804_vm10 = vcmp.eq.s32.totalorder %v2783_v23, %v746_v33  ;;  %s2606_s25 = smov 3  }
  0x22   : > { %s2075_s0 = sshll.u32 %s624_s30, 4  ;;  %s3183_s30 = smov 127   ;;  %vm2813_vm12 = vcmp.eq.s32.totalorder %v2783_v23, %v747_v34  ;;  %v858_v41 = vadd.s32 1, %v746_v33  ;;  %v859_v42 = vadd.s32 1, %v747_v34  ;;  %v749_v44 = vmul.u32 2, %v656_v36 }
  0x23   : > { %s627_s27 = scalar_lea.vmem %s3205_s26, %s2075_s0  ;;  %vm865_vm13 = vcmp.eq.s32.totalorder %v2783_v23, %v857_v38  ;;  %v860_v48 = vadd.s32 1, %v748_v43  ;;  %v750_v52 = vmul.u32 2, %v657_v45  ;;  %v751_v53 = vmul.u32 2, %v658_v46  ;;  %s3223_s0 = sld [smem:[#allocation8_spill]] }
  0x24   : > { %v628_v1 = vld [vmem:[%s627_s27] sm:$0xff]  ;;  %v629_v2 = vld [vmem:[%s627_s27 + $0x8] sm:$0xff]  ;;  %vm2306_vm15 = vmpackc.low %vm865_vm13, %vm864_vm9  ;;  %v861_v51 = vadd.s32 1, %v749_v44  ;;  %s3229_s26 = sld [smem:[#allocation9_spill]]  ;;  %s3188_s27 = smov 126  }
  0x25   : > { %vm630_vm0 = vcmp.ge.f32.partialorder %v628_v1, 0.0  ;;  %vm631_vm1 = vcmp.ge.f32.partialorder %v629_v2, 0.0  ;;  %v632_v3 = vmul.f32 0.1, %v628_v1  ;;  %v633_v4 = vmul.f32 0.1, %v629_v2 }
  0x26   : > { %vm868_vm13 = vcmp.eq.s32.totalorder %v2783_v23, %v860_v48  ;;  %v862_v56 = vadd.s32 1, %v750_v52  ;;  %v863_v57 = vadd.s32 1, %v751_v53 }
  0x27   : > { %v634_v5 = vsel %vm630_vm0, %v628_v1, %v632_v3  ;;  %v635_v6 = vsel %vm631_vm1, %v629_v2, %v633_v4  ;;  %vm866_vm0 = vcmp.eq.s32.totalorder %v2783_v23, %v858_v41  ;;  %vm867_vm1 = vcmp.eq.s32.totalorder %v2783_v23, %v859_v42  ;;  %v1045_v41 = vld [vmem:[%s3239_s7] sm:$0xff] }
  0x28   : > { %v2435_v7 = vpack.i.bf16 %v635_v6, %v634_v5  ;;  %vm871_vm11 = vcmp.eq.s32.totalorder %v2783_v23, %v863_v57  ;;  %v2602_v1 = vmov 0  }
  0x29   : > { %v776_v62 = vld [vmem:[%s3223_s0] sm:$0xff]  ;;  %2450 = vset.pattern.permute.xlu1 %v2602_v1  ;;  %2456 = vset.pattern.permute.xlu0 %v2602_v1  ;;  %s3236_s0 = sld [smem:[#allocation10_spill]] }
  0x2a   : > { %2436 = vrot.lane.b32.xlu0 %v2435_v7, %s3187_s28  ;;  %v1035_v63 = vld [vmem:[%s3229_s26] sm:$0xff]  ;;  %s3185_s26 = smov 2  }
  0x9c   : > { %v2437_v8 = vpop.permute.xlu0 %2436 }
  0x9d   : > { %v2439_v9 = vunpack.i.h.bf16 %v2437_v8  ;;  %v2438_v10 = vunpack.i.l.bf16 %v2437_v8 }
  0x9f   : > { %v646_v11 = vsel %vm3179_vm2, 0.0, %v2439_v9  ;;  %v645_v12 = vsel %vm3179_vm2, 0.0, %v2438_v10  ;;  %vm2832_vm2 = vcmp.eq.s32.totalorder %v2783_v23, %v749_v44 }
  0xa0   : > { %v2293_v13 = vpack.c.bf16 %v646_v11, %v645_v12  ;;  %v648_v14 = vsel %vm647_vm3, %v645_v12, 0.0  ;;  %v649_v15 = vsel %vm647_vm3, %v646_v11, 0.0  ;;  %vm2827_vm3 = vcmp.eq.s32.totalorder %v2783_v23, %v748_v43 }
  0xa1   : > { %v2440_v16 = vpack.i.bf16 %v649_v15, %v648_v14 }
  0xa2   : > { %2295 = vmatpush3.bf16.msk.msra.mxu0 %vm2294_vm4, %v2293_v13  ;;  %vm2309_vm4 = vmpackc.low %vm867_vm1, %vm866_vm0  ;;  %vm2844_vm0 = vcmp.eq.s32.totalorder %v2783_v23, %v750_v52  ;;  %vm2849_vm1 = vcmp.eq.s32.totalorder %v2783_v23, %v751_v53 }
  0xa3   : > { %2441 = vrot.lane.b32.xlu0 %v2440_v16, %s3183_s30  ;;  %2296 = vmatprep.subr.bf16.mxu0 %v2596_v0  ;;  %vm2327_vm9 = vmpackc.low %vm2849_vm1, %vm2844_vm0  ;;  %vm1068_vm0 = vcmask 1031168   ;;  %vm1076_vm1 = vcmask 195584  }
 0x115   : > { %v2442_v18 = vpop.permute.xlu0 %2441 }
 0x116   : > { %v2444_v20 = vunpack.i.h.bf16 %v2442_v18  ;;  %v2443_v21 = vunpack.i.l.bf16 %v2442_v18  ;;  %2446 = vrot.lane.b32.xlu1 %v2442_v18, %s3183_s30 }
 0x118   : > { %v2297_v24 = vpack.c.bf16 %v2444_v20, %v2443_v21  ;;  %v1043_v20 = vld [vmem:[%s3232_s5] sm:$0xff]  ;;  %s3244_s5 = smov 1  }
 0x11a   : > { %2298 = vmatpush3.bf16.msra.mxu0 %v2297_v24  ;;  %2301 = vmatpush3.bf16.msra.mxu1 %v2297_v24 }
 0x11b   : > { %2302 = vmatprep.subr.bf16.mxu1 %v2596_v0  ;;  %2305 = vmatprep.subr.bf16.mxu0 %v2596_v0 }
 0x11c   : > { %1038 = vperm.xlu1 %2450, %v1035_v63  }
 0x11d   : > { %2153 = vmatmul.mubr.msk.f32.vlgmr.msra.gmra.mrb[0].mxu0 %vm3182_vm6, %v661_v29  ;;  %v1042_v29 = vld [vmem:[%s3236_s0] sm:$0xff]  ;;  %s2607_s0 = smov 122  }
 0x11e   : > { %2182 = vmatprep.mubr.msk.f32.mxu0 %vm3180_vm5, %v2600_v17  ;;  %2307 = vmatpush3.bf16.msk.msra.mxu0 %vm2306_vm15, %v2601_v49  ;;  %vm869_vm15 = vcmp.eq.s32.totalorder %v2783_v23, %v861_v51  ;;  %vm870_vm5 = vcmp.eq.s32.totalorder %v2783_v23, %v862_v56 }
 0x11f   : > { %2308 = vmatprep.subr.bf16.mxu0 %v2596_v0  ;;  %vm2312_vm14 = vmpackc.low %vm869_vm15, %vm868_vm13  ;;  %vm2604_vm13 = vmmov 1  }
 0x120   : > { %vm2315_vm6 = vmpackc.low %vm871_vm11, %vm870_vm5 }
 0x121   : > { %vm3225_vm5 = vmpackc.low %vm2798_vm8, %vm2791_vm7  ;;  %vm3230_vm8 = vcmask 7168  }
 0x122   : > { %2310 = vmatpush3.bf16.msk.msra.mxu0 %vm2309_vm4, %v2601_v49  ;;  %vm3224_vm4 = vcmask 261120   ;;  %vm3227_vm11 = vmpackc.low %vm2813_vm12, %vm2804_vm10  ;;  %vm1061_vm12 = vcmask 1039360  }
 0x123   : > { %2311 = vmatprep.subr.bf16.mxu0 %v2596_v0  ;;  %vm3231_vm10 = vmmov %vm3230_vm8 }
 0x126   : > { %2313 = vmatpush3.bf16.msk.msra.mxu0 %vm2312_vm14, %v2601_v49  ;;  %vm3228_vm14 = vmpackc.low %vm2832_vm2, %vm2827_vm3  ;;  %vm888_vm2 = vcmask 523264  }
 0x127   : > { %2314 = vmatprep.subr.bf16.mxu0 %v2596_v0  ;;  %vm3233_vm3 = vmmov %vm3230_vm8 }
 0x12a   : > { %2316 = vmatpush3.bf16.msk.msra.mxu0 %vm2315_vm6, %v2601_v49  ;;  %vm3226_vm6 = vmmov 0  }
 0x12b   : > { %2329 = vmatprep.subr.bf16.mxu0 %v2596_v0 }
 0x188   : > { %v2447_v58 = vpop.permute.xlu1 %2446 }
 0x189   : > { %v2449_v59 = vunpack.i.h.bf16 %v2447_v58  ;;  %v2448_v60 = vunpack.i.l.bf16 %v2447_v58 }
 0x18b   : > { %v2303_v61 = vpack.c.bf16 %v2449_v59, %v2448_v60 }
 0x18d   : > { %2304 = vmatpush3.bf16.msra.mxu1 %v2303_v61 }
 0x18e   : > { %2317 = vmatprep.subr.bf16.mxu1 %v2596_v0 }
 0x190   : > { %2164 = vmatmul.mubr.msk.f32.vlgmr.msra.gmra.mrb[0].mxu1 %vm3224_vm4, %v776_v62 }
 0x191   : > { %2319 = vmatpush3.bf16.msk.msra.mxu1 %vm3225_vm5, %v2601_v49  ;;  %2201 = vmatprep.mubr.msk.f32.mxu1 %vm3226_vm6, %v2600_v17  ;;  %vm3237_vm5 = vmmov %vm3233_vm3 }
 0x192   : > { %2320 = vmatprep.subr.bf16.mxu1 %v2596_v0 }
 0x195   : > { %2322 = vmatpush3.bf16.msk.msra.mxu1 %vm3227_vm11, %v2601_v49  ;;  %vm3238_vm11 = vmmov %vm3233_vm3 }
 0x196   : > { %2323 = vmatprep.subr.bf16.mxu1 %v2596_v0 }
 0x199   : > { %2325 = vmatpush3.bf16.msk.msra.mxu1 %vm3228_vm14, %v2601_v49  ;;  %vm1469_vm14 = vcmask 15360  }
 0x19a   : > { %2326 = vmatprep.subr.bf16.mxu1 %v2596_v0 }
 0x19b   : > { %v1039_v9 = vpop.permute.xlu1 %1038 }
 0x19d   : > { %2328 = vmatpush3.bf16.msk.msra.mxu1 %vm2327_vm9, %v2601_v49  ;;  %vm2047_vm9 = vmneg %vm3233_vm3  ;;  %v1044_v49 = vld [vmem:[%s3240_s6] sm:$0xff] }
 0x19e   : > { %2333 = vmatprep.subr.bf16.mxu1 %v2596_v0  ;;  %vm2917_vm15 = vmpackc.low %vm2604_vm13, %vm2047_vm9  ;;  %vm1279_vm9 = vcmask 998400  }
 0x1f0   : > { %v740_v2 = vpop.f32.mrb[0].mxu0 }
 0x1f1   : > { %v2154_v3 = vpop.f32.mrb[1].mxu0  ;;  %2202 = vmatmul.mubr.msk.f32.vlgmr.msra.gmra.mrb[2].mxu1 %vm888_vm2, %v740_v2 }
 0x1f2   : > { %2219 = vmatprep.mubr.msk.f32.mxu1 %vm3226_vm6, %v2600_v17  ;;  %v1463_v3 = vld [vmem:[%s3171_s13] sm:$0xff] }
 0x263   : > { %v852_v4 = vpop.f32.mrb[0].mxu1 }
 0x264   : > { %v2165_v5 = vpop.f32.mrb[1].mxu1  ;;  %2183 = vmatmul.mubr.msk.f32.vlgmr.msra.gmra.mrb[2].mxu0 %vm888_vm2, %v852_v4  ;;  %v1253_v4 = vld [vmem:[%s3167_s9] sm:$0xff] }
 0x265   : > { %2210 = vmatprep.mubr.msk.f32.mxu0 %vm3226_vm6, %v2600_v17 }
 0x2c4   : > { %v1031_v6 = vpop.f32.mrb[2].mxu1 }
 0x2c5   : > { %v2203_v7 = vpop.f32.mrb[3].mxu1 }
 0x337   : > { %v958_v8 = vpop.f32.mrb[2].mxu0 }
 0x338   : > { %v1032_v10 = vadd.f32 %v1031_v6, %v958_v8  ;;  %v2184_v11 = vpop.f32.mrb[3].mxu0 }
 0x33a   : > { %v2900_v12 = vadd.f32 %v1039_v9, %v1032_v10 }
 0x33c   : > { %vm1046_vm7 = vcmp.ge.f32.partialorder %v2900_v12, 0.0  ;;  %v1047_v13 = vmul.f32 0.1, %v2900_v12 }
 0x33e   : > { %v1048_v14 = vsel %vm1046_vm7, %v2900_v12, %v1047_v13  ;;  %vm1263_vm7 = vcmask 23552  }
 0x33f   : > { %1050 = vrot.lane.b32.xlu0 %v1048_v14, %s3187_s28 }
 0x3b1   : > { %v1051_v15 = vpop.permute.xlu0 %1050 }
 0x3b2   : > { %v1054_v16 = vsel %vm3230_vm8, %v1051_v15, 0.0  ;;  %v1053_v18 = vsel %vm3231_vm10, 0.0, %v1051_v15  ;;  %vm1272_vm8 = vcmask 1022976   ;;  %vm2053_vm10 = vmneg %vm1263_vm7 }
 0x3b3   : > { %1064 = vrot.lane.b32.xlu0 %v1053_v18, %s3188_s27  ;;  %v2451_v19 = vpack.i.bf16 %v1054_v16, %v1053_v18  ;;  %vm2339_vm3 = vmpackc.low %vm2604_vm13, %vm2053_vm10 }
 0x3b5   : > { %2452 = vrot.lane.b32.xlu1 %v2451_v19, %s3183_s30 }
 0x3b7   : > { %1073 = vperm.xlu0 %2456, %v1043_v20  }
 0x3b9   : > { %1066 = vrot.lane.b32.xlu1 %v1054_v16, %s3188_s27 }
 0x425   : > { %v1065_v28 = vpop.permute.xlu0 %1064 }
 0x427   : > { %v2453_v21 = vpop.permute.xlu1 %2452 }
 0x428   : > { %v2455_v22 = vunpack.i.h.bf16 %v2453_v21  ;;  %v2454_v23 = vunpack.i.l.bf16 %v2453_v21  ;;  %v1252_v21 = vld [vmem:[%s3241_s8] sm:$0xff] }
 0x42a   : > { %v1062_v24 = vsel %vm1061_vm12, %v2454_v23, %v2455_v22 }
 0x42b   : > { %v2330_v26 = vpack.c.bf16 %v1062_v24, %v1051_v15  ;;  %v1067_v27 = vpop.permute.xlu1 %1066 }
 0x42c   : > { %v1069_v30 = vsel %vm1068_vm0, %v1065_v28, %v1067_v27 }
 0x42d   : > { %2332 = vmatpush3.bf16.msk.msra.mxu0 %vm2917_vm15, %v2330_v26 }
 0x42e   : > { %2208 = vmatprep.subr.mxu0 %v2600_v17 }
 0x431   : > { %2209 = vmatpush3.msra.mxu0 %v1069_v30 }
 0x432   : > { %2211 = vmatmul.mubr.msk.f32.vlgmr.msra.gmra.mrb[4].mxu0 %vm1076_vm1, %v1042_v29  ;;  %2337 = vmatprep.subr.bf16.mxu0 %v2596_v0 }
 0x433   : > { %2228 = vmatprep.mubr.msk.f32.mxu0 %vm3226_vm6, %v2600_v17 }
 0x436   : > { %v1074_v31 = vpop.permute.xlu0 %1073 }
 0x505   : > { %v1146_v32 = vpop.f32.mrb[4].mxu0 }
 0x506   : > { %v1147_v33 = vadd.f32 %v1146_v32, %v1074_v31  ;;  %v2212_v34 = vpop.f32.mrb[5].mxu0 }
 0x507   : > { %v1462_v34 = vld [vmem:[%s3170_s12] sm:$0xff] }
 0x508   : > { %v1151_v35 = vmul.f32 0.1, %v1147_v33  ;;  %vm1150_vm4 = vcmp.ge.f32.partialorder %v1147_v33, 0.0 }
 0x50a   : > { %v1152_v36 = vsel %vm1150_vm4, %v1147_v33, %v1151_v35  ;;  %vm2059_vm4 = vmneg %vm1469_vm14 }
 0x50b   : > { %1154 = vrot.lane.b32.xlu1 %v1152_v36, %s3187_s28  ;;  %s3245_s28 = smov 2  }
 0x57d   : > { %v1155_v37 = vpop.permute.xlu1 %1154 }
 0x57e   : > { %v1158_v38 = vsel %vm3237_vm5, %v1155_v37, 0.0  ;;  %v1157_v39 = vsel %vm3238_vm11, 0.0, %v1155_v37  ;;  %vm2993_vm5 = vmpackc.low %vm2604_vm13, %vm2059_vm4  ;;  %vm1496_vm11 = vcmask 1014784  }
 0x57f   : > { %1167 = vrot.lane.b32.xlu0 %v1157_v39, %s3188_s27  ;;  %v2457_v40 = vpack.i.bf16 %v1158_v38, %v1157_v39 }
 0x581   : > { %2458 = vrot.lane.b32.xlu1 %v2457_v40, %s3183_s30 }
 0x583   : > { %1175 = vperm.xlu0 %2456, %v1045_v41  }
 0x585   : > { %1169 = vrot.lane.b32.xlu1 %v1158_v38, %s3188_s27 }
 0x587   : > { %1466 = vrot.lane.b32.xlu0 %v1048_v14, %s3185_s26  ;;  %s3248_s26 = smov 127  }
 0x5f1   : > { %v1168_v48 = vpop.permute.xlu0 %1167 }
 0x5f3   : > { %v2459_v42 = vpop.permute.xlu1 %2458 }
 0x5f4   : > { %v2461_v43 = vunpack.i.h.bf16 %v2459_v42  ;;  %v2460_v44 = vunpack.i.l.bf16 %v2459_v42 }
 0x5f6   : > { %v1165_v45 = vsel %vm1061_vm12, %v2460_v44, %v2461_v43 }
 0x5f7   : > { %v2334_v46 = vpack.c.bf16 %v1165_v45, %v1155_v37  ;;  %v1170_v47 = vpop.permute.xlu1 %1169 }
 0x5f8   : > { %v1171_v50 = vsel %vm1068_vm0, %v1168_v48, %v1170_v47 }
 0x5f9   : > { %2336 = vmatpush3.bf16.msk.msra.mxu1 %vm2917_vm15, %v2334_v46 }
 0x5fa   : > { %2217 = vmatprep.subr.mxu1 %v2600_v17 }
 0x5fd   : > { %2218 = vmatpush3.msra.mxu1 %v1171_v50 }
 0x5fe   : > { %2220 = vmatmul.mubr.msk.f32.vlgmr.msra.gmra.mrb[4].mxu1 %vm1076_vm1, %v1044_v49  ;;  %2341 = vmatprep.subr.bf16.mxu1 %v2596_v0 }
 0x5ff   : > { %2237 = vmatprep.mubr.msk.f32.mxu1 %vm3226_vm6, %v2600_v17 }
 0x602   : > { %v1176_v51 = vpop.permute.xlu0 %1175 }
 0x606   : > { %v2954_v52 = vpop.permute.xlu0 %1466 }
 0x607   : > { %v1470_v53 = vsel %vm1469_vm14, 0.0, %v2954_v52  ;;  %v1471_v54 = vsel %vm1469_vm14, %v2954_v52, 0.0 }
 0x608   : > { %v2467_v55 = vpack.i.bf16 %v1471_v54, %v1470_v53 }
 0x60a   : > { %2468 = vrot.lane.b32.xlu0 %v2467_v55, %s3183_s30  ;;  %s3191_s30 = smov 124  }
 0x67c   : > { %v2469_v5 = vpop.permute.xlu0 %2468 }
 0x67d   : > { %v2471_v10 = vunpack.i.h.bf16 %v2469_v5  ;;  %v2470_v11 = vunpack.i.l.bf16 %v2469_v5 }
 0x67f   : > { %v1478_v18 = vsel %vm1061_vm12, %v2470_v11, %v2471_v10 }
 0x680   : > { %v2346_v28 = vpack.c.bf16 %v1478_v18, %v2954_v52 }
 0x6d1   : > { %v1247_v56 = vpop.f32.mrb[4].mxu1 }
 0x6d2   : > { %v1248_v57 = vadd.f32 %v1247_v56, %v1176_v51  ;;  %v2221_v58 = vpop.f32.mrb[5].mxu1  ;;  %v1465_v56 = vld [vmem:[%s3173_s15] sm:$0xff] }
 0x6d4   : > { %v2962_v59 = vadd.f32 %v1248_v57, %v2900_v12 }
 0x6d6   : > { %vm1256_vm2 = vcmp.ge.f32.partialorder %v2962_v59, 0.0  ;;  %v1257_v60 = vmul.f32 0.1, %v2962_v59 }
 0x6d8   : > { %v1258_v61 = vsel %vm1256_vm2, %v2962_v59, %v1257_v60  ;;  %vm1504_vm2 = vcmask 326656  }
 0x6d9   : > { %1260 = vrot.lane.b32.xlu1 %v1258_v61, %s2606_s25  ;;  %s2610_s25 = smov 6  }
 0x74b   : > { %v1261_v62 = vpop.permute.xlu1 %1260 }
 0x74c   : > { %v1265_v63 = vsel %vm1263_vm7, %v1261_v62, 0.0  ;;  %v1264_v1 = vsel %vm1263_vm7, 0.0, %v1261_v62 }
 0x74d   : > { %1275 = vrot.lane.b32.xlu0 %v1264_v1, %s2607_s0  ;;  %v2462_v2 = vpack.i.bf16 %v1265_v63, %v1264_v1 }
 0x74f   : > { %2463 = vrot.lane.b32.xlu1 %v2462_v2, %s3189_s21  ;;  %v1254_v2 = vld [vmem:[%s3168_s10] sm:$0xff] }
 0x751   : > { %2478 = vrot.lane.b32.xlu0 %v2467_v55, %s3189_s21 }
 0x753   : > { %1277 = vrot.lane.b32.xlu1 %v1265_v63, %s2607_s0 }
 0x755   : > { %1494 = vrot.lane.b32.xlu0 %v1471_v54, %s3191_s30 }
 0x757   : > { %2473 = vrot.lane.b32.xlu1 %v2467_v55, %s3188_s27 }
 0x759   : > { %1501 = vperm.xlu0 %2456, %v1463_v3  }
 0x75b   : > { %1492 = vrot.lane.b32.xlu1 %v1470_v53, %s3191_s30 }
 0x75f   : > { %1284 = vperm.xlu1 %2450, %v1253_v4  }
 0x7bf   : > { %v1276_v6 = vpop.permute.xlu0 %1275 }
 0x7c1   : > { %v2464_v7 = vpop.permute.xlu1 %2463 }
 0x7c2   : > { %v2466_v8 = vunpack.i.h.bf16 %v2464_v7  ;;  %v2465_v9 = vunpack.i.l.bf16 %v2464_v7 }
 0x7c3   : > { %v2479_v16 = vpop.permute.xlu0 %2478 }
 0x7c4   : > { %v1273_v13 = vsel %vm1272_vm8, %v2465_v9, %v2466_v8  ;;  %v2481_v19 = vunpack.i.h.bf16 %v2479_v16  ;;  %v2480_v22 = vunpack.i.l.bf16 %v2479_v16 }
 0x7c5   : > { %v2338_v14 = vpack.c.bf16 %v1273_v13, %v1261_v62  ;;  %v1278_v15 = vpop.permute.xlu1 %1277 }
 0x7c6   : > { %v1280_v23 = vsel %vm1279_vm9, %v1276_v6, %v1278_v15  ;;  %v1490_v30 = vsel %vm1272_vm8, %v2480_v22, %v2481_v19 }
 0x7c7   : > { %2340 = vmatpush3.bf16.msk.msra.mxu0 %vm2339_vm3, %v2338_v14  ;;  %v1495_v33 = vpop.permute.xlu0 %1494  ;;  %vm3246_vm3 = vcmask 7168  }
 0x7c8   : > { %2226 = vmatprep.subr.mxu0 %v2600_v17  ;;  %vm3247_vm4 = vmmov %vm3246_vm3 }
 0x7c9   : > { %v2474_v20 = vpop.permute.xlu1 %2473 }
 0x7ca   : > { %v2476_v24 = vunpack.i.h.bf16 %v2474_v20  ;;  %v2475_v26 = vunpack.i.l.bf16 %v2474_v20 }
 0x7cb   : > { %2227 = vmatpush3.msra.mxu0 %v1280_v23 }
 0x7cc   : > { %v1484_v29 = vsel %vm1068_vm0, %v2475_v26, %v2476_v24  ;;  %2229 = vmatmul.mubr.msk.f32.vlgmr.msra.gmra.mrb[6].mxu0 %vm1076_vm1, %v1252_v21  ;;  %2345 = vmatprep.subr.bf16.mxu0 %v2596_v0  ;;  %v1464_v21 = vld [vmem:[%s3172_s14] sm:$0xff] }
 0x7cd   : > { %2348 = vmatpush3.bf16.msk.msra.mxu0 %vm2993_vm5, %v2346_v28  ;;  %2250 = vmatprep.mubr.msk.f32.mxu0 %vm3226_vm6, %v2600_v17  ;;  %v2350_v31 = vpack.c.bf16 %v1490_v30, %v1484_v29  ;;  %v1493_v32 = vpop.permute.xlu1 %1492 }
 0x7ce   : > { %2349 = vmatprep.subr.bf16.mxu0 %v2596_v0  ;;  %v1497_v35 = vsel %vm1496_vm11, %v1493_v32, %v1495_v33 }
 0x7d1   : > { %2351 = vmatpush3.bf16.msra.mxu0 %v2350_v31 }
 0x7d2   : > { %2248 = vmatprep.subr.mxu0 %v2600_v17 }
 0x7d5   : > { %2249 = vmatpush3.msra.mxu0 %v1497_v35 }
 0x7d6   : > { %2251 = vmatmul.mubr.msk.f32.vlgmr.msra.gmra.mrb[8].mxu0 %vm1504_vm2, %v1462_v34  ;;  %2359 = vmatprep.subr.bf16.mxu0 %v2596_v0 }
 0x7d7   : > { %2276 = vmatprep.mubr.msk.f32.mxu0 %vm3226_vm6, %v2600_v17 }
 0x7d8   : > { %v1502_v42 = vpop.permute.xlu0 %1501 }
 0x7de   : > { %v1285_v36 = vpop.permute.xlu1 %1284 }
 0x89f   : > { %v1356_v37 = vpop.f32.mrb[6].mxu0 }
 0x8a0   : > { %v1357_v38 = vadd.f32 %v1356_v37, %v1285_v36  ;;  %v2230_v39 = vpop.f32.mrb[7].mxu0 }
 0x8a2   : > { %v1361_v40 = vmul.f32 0.1, %v1357_v38  ;;  %vm1360_vm7 = vcmp.ge.f32.partialorder %v1357_v38, 0.0 }
 0x8a4   : > { %v1362_v41 = vsel %vm1360_vm7, %v1357_v38, %v1361_v40 }
 0x8a5   : > { %1364 = vrot.lane.b32.xlu1 %v1362_v41, %s3244_s5  ;;  %s3249_s5 = smov 125  }
 0x8a9   : > { %v1574_v43 = vpop.f32.mrb[8].mxu0 }
 0x8aa   : > { %v1575_v44 = vadd.f32 %v1574_v43, %v1502_v42  ;;  %v2252_v45 = vpop.f32.mrb[9].mxu0 }
 0x8ac   : > { %v1579_v46 = vmul.f32 0.1, %v1575_v44  ;;  %vm1578_vm10 = vcmp.ge.f32.partialorder %v1575_v44, 0.0 }
 0x8ae   : > { %v1580_v47 = vsel %vm1578_vm10, %v1575_v44, %v1579_v46  ;;  %vm1724_vm10 = vcmask 973824  }
 0x8af   : > { %1582 = vrot.lane.b32.xlu0 %v1580_v47, %s3245_s28 }
 0x917   : > { %v1365_v48 = vpop.permute.xlu1 %1364 }
 0x918   : > { %v1368_v49 = vsel %vm3246_vm3, %v1365_v48, 0.0  ;;  %v1367_v50 = vsel %vm3247_vm4, 0.0, %v1365_v48  ;;  %vm1731_vm3 = vcmask 949248  }
 0x919   : > { %v2482_v51 = vpack.i.bf16 %v1368_v49, %v1367_v50  ;;  %1377 = vrot.lane.b32.xlu0 %v1367_v50, %s3188_s27 }
 0x91b   : > { %2483 = vrot.lane.b32.xlu1 %v2482_v51, %s3248_s26 }
 0x91f   : > { %1379 = vrot.lane.b32.xlu1 %v1368_v49, %s3188_s27 }
 0x921   : > { %v1583_v52 = vpop.permute.xlu0 %1582 }
 0x922   : > { %v1585_v53 = vsel %vm1469_vm14, 0.0, %v1583_v52  ;;  %v1586_v54 = vsel %vm1469_vm14, %v1583_v52, 0.0 }
 0x923   : > { %v2492_v55 = vpack.i.bf16 %v1586_v54, %v1585_v53 }
 0x925   : > { %2493 = vrot.lane.b32.xlu1 %v2492_v55, %s3188_s27  ;;  %2488 = vrot.lane.b32.xlu0 %v2492_v55, %s3248_s26  ;;  %s2611_s27 = smov 116  }
 0x929   : > { %1607 = vrot.lane.b32.xlu1 %v1585_v53, %s3191_s30  ;;  %2498 = vrot.lane.b32.xlu0 %v2492_v55, %s3189_s21  ;;  %s2612_s21 = smov 119  }
 0x92d   : > { %1615 = vperm.xlu1 %2450, %v1465_v56   ;;  %1609 = vrot.lane.b32.xlu0 %v1586_v54, %s3191_s30  ;;  %s620_s30 = sand.u32 1, %s2586_s22  }
 0x98b   : > { %v1378_v63 = vpop.permute.xlu0 %1377 }
 0x98d   : > { %v2484_v57 = vpop.permute.xlu1 %2483 }
 0x98e   : > { %v2486_v58 = vunpack.i.h.bf16 %v2484_v57  ;;  %v2485_v60 = vunpack.i.l.bf16 %v2484_v57 }
 0x990   : > { %v1375_v61 = vsel %vm1061_vm12, %v2485_v60, %v2486_v58 }
 0x991   : > { %v2342_v62 = vpack.c.bf16 %v1375_v61, %v1365_v48  ;;  %v1380_v1 = vpop.permute.xlu1 %1379 }
 0x992   : > { %v1381_v3 = vsel %vm1068_vm0, %v1378_v63, %v1380_v1 }
 0x993   : > { %2344 = vmatpush3.bf16.msk.msra.mxu1 %vm2917_vm15, %v2342_v62 }
 0x994   : > { %2235 = vmatprep.subr.mxu1 %v2600_v17 }
 0x997   : > { %v2494_v4 = vpop.permute.xlu1 %2493  ;;  %2236 = vmatpush3.msra.mxu1 %v1381_v3  ;;  %v2489_v5 = vpop.permute.xlu0 %2488  ;;  %v1695_v3 = vld [vmem:[%s3177_s19] sm:$0xff] }
 0x998   : > { %v2491_v6 = vunpack.i.h.bf16 %v2489_v5  ;;  %v2490_v7 = vunpack.i.l.bf16 %v2489_v5  ;;  %2352 = vmatprep.subr.bf16.mxu1 %v2596_v0  ;;  %2238 = vmatmul.mubr.msk.f32.vlgmr.msra.gmra.mrb[6].mxu1 %vm1076_vm1, %v1254_v2  ;;  %v2496_v25 = vunpack.i.h.bf16 %v2494_v4  ;;  %v2495_v8 = vunpack.i.l.bf16 %v2494_v4  ;;  %v1255_v2 = vld [vmem:[%s3169_s11] sm:$0xff] }
 0x999   : > { %2263 = vmatprep.mubr.msk.f32.mxu1 %vm3226_vm6, %v2600_v17  ;;  %vm1703_vm1 = vcmask 48128  }
 0x99a   : > { %v1593_v9 = vsel %vm1061_vm12, %v2490_v7, %v2491_v6  ;;  %v1599_v15 = vsel %vm1068_vm0, %v2495_v8, %v2496_v25 }
 0x99b   : > { %v2353_v10 = vpack.c.bf16 %v1593_v9, %v1583_v52  ;;  %v2499_v11 = vpop.permute.xlu0 %2498  ;;  %v1608_v20 = vpop.permute.xlu1 %1607  ;;  %v1692_v52 = vld [vmem:[%s3174_s16] sm:$0xff] }
 0x99c   : > { %v2501_v13 = vunpack.i.h.bf16 %v2499_v11  ;;  %v2500_v14 = vunpack.i.l.bf16 %v2499_v11 }
 0x99d   : > { %2355 = vmatpush3.bf16.msk.msra.mxu1 %vm2993_vm5, %v2353_v10 }
 0x99e   : > { %v1605_v16 = vsel %vm1272_vm8, %v2500_v14, %v2501_v13  ;;  %2356 = vmatprep.subr.bf16.mxu1 %v2596_v0 }
 0x99f   : > { %v2357_v18 = vpack.c.bf16 %v1605_v16, %v1599_v15  ;;  %v1610_v19 = vpop.permute.xlu0 %1609 }
 0x9a0   : > { %v1611_v22 = vsel %vm1496_vm11, %v1608_v20, %v1610_v19 }
 0x9a1   : > { %2358 = vmatpush3.bf16.msra.mxu1 %v2357_v18 }
 0x9a2   : > { %2261 = vmatprep.subr.mxu1 %v2600_v17 }
 0x9a5   : > { %2262 = vmatpush3.msra.mxu1 %v1611_v22 }
 0x9a6   : > { %2264 = vmatmul.mubr.msk.f32.vlgmr.msra.gmra.mrb[8].mxu1 %vm1504_vm2, %v1464_v21  ;;  %2366 = vmatprep.subr.bf16.mxu1 %v2596_v0  ;;  %v1694_v21 = vld [vmem:[%s3176_s18] sm:$0xff] }
 0x9a7   : > { %2289 = vmatprep.mubr.msk.f32.mxu1 %vm3226_vm6, %v2600_v17  ;;  %vm2065_vm6 = vmneg %vm1703_vm1 }
 0x9a8   : > { %vm2361_vm7 = vmpackc.low %vm2604_vm13, %vm2065_vm6 }
 0x9ac   : > { %v1616_v23 = vpop.permute.xlu1 %1615 }
 0xa79   : > { %v1687_v24 = vpop.f32.mrb[8].mxu1 }
 0xa7a   : > { %v1688_v26 = vadd.f32 %v1687_v24, %v1616_v23  ;;  %v2265_v28 = vpop.f32.mrb[9].mxu1 }
 0xa7c   : > { %v3061_v29 = vadd.f32 %v1688_v26, %v2900_v12  ;;  %v1693_v12 = vld [vmem:[%s3175_s17] sm:$0xff] }
 0xa7e   : > { %vm1696_vm15 = vcmp.ge.f32.partialorder %v3061_v29, 0.0  ;;  %v1697_v30 = vmul.f32 0.1, %v3061_v29 }
 0xa80   : > { %v1698_v31 = vsel %vm1696_vm15, %v3061_v29, %v1697_v30 }
 0xa81   : > { %1700 = vrot.lane.b32.xlu0 %v1698_v31, %s2610_s25  ;;  %s3251_s25 = smov 124  }
 0xaf3   : > { %v1701_v32 = vpop.permute.xlu0 %1700 }
 0xaf4   : > { %v1704_v33 = vsel %vm1703_vm1, 0.0, %v1701_v32  ;;  %v1705_v34 = vsel %vm1703_vm1, %v1701_v32, 0.0 }
 0xaf5   : > { %v2507_v35 = vpack.i.bf16 %v1705_v34, %v1704_v33 }
 0xaf7   : > { %2508 = vrot.lane.b32.xlu0 %v2507_v35, %s2607_s0  ;;  %2503 = vrot.lane.b32.xlu1 %v2507_v35, %s3249_s5  ;;  %s3250_s0 = smov 126  }
 0xafb   : > { %1727 = vrot.lane.b32.xlu0 %v1704_v33, %s2611_s27  ;;  %2513 = vrot.lane.b32.xlu1 %v2507_v35, %s2612_s21 }
 0xaff   : > { %1736 = vperm.xlu0 %2456, %v1693_v12   ;;  %1729 = vrot.lane.b32.xlu1 %v1705_v34, %s2611_s27 }
 0xb69   : > { %v2509_v36 = vpop.permute.xlu0 %2508  ;;  %v2504_v37 = vpop.permute.xlu1 %2503 }
 0xb6a   : > { %v2506_v38 = vunpack.i.h.bf16 %v2504_v37  ;;  %v2505_v39 = vunpack.i.l.bf16 %v2504_v37  ;;  %v2511_v40 = vunpack.i.h.bf16 %v2509_v36  ;;  %v2510_v41 = vunpack.i.l.bf16 %v2509_v36 }
 0xb6c   : > { %v1712_v42 = vsel %vm1272_vm8, %v2505_v39, %v2506_v38  ;;  %v1718_v47 = vsel %vm1279_vm9, %v2510_v41, %v2511_v40 }
 0xb6d   : > { %v2360_v43 = vpack.c.bf16 %v1712_v42, %v1701_v32  ;;  %v2514_v44 = vpop.permute.xlu1 %2513  ;;  %v1728_v51 = vpop.permute.xlu0 %1727 }
 0xb6e   : > { %v2516_v45 = vunpack.i.h.bf16 %v2514_v44  ;;  %v2515_v46 = vunpack.i.l.bf16 %v2514_v44 }
 0xb6f   : > { %2362 = vmatpush3.bf16.msk.msra.mxu0 %vm2361_vm7, %v2360_v43 }
 0xb70   : > { %v1725_v48 = vsel %vm1724_vm10, %v2515_v46, %v2516_v45  ;;  %2363 = vmatprep.subr.bf16.mxu0 %v2596_v0 }
 0xb71   : > { %v2364_v49 = vpack.c.bf16 %v1725_v48, %v1718_v47  ;;  %v1730_v50 = vpop.permute.xlu1 %1729 }
 0xb72   : > { %v1732_v53 = vsel %vm1731_vm3, %v1728_v51, %v1730_v50 }
 0xb73   : > { %2365 = vmatpush3.bf16.msra.mxu0 %v2364_v49 }
 0xb74   : > { %2274 = vmatprep.subr.mxu0 %v2600_v17 }
 0xb77   : > { %2275 = vmatpush3.msra.mxu0 %v1732_v53 }
 0xb78   : > { %2277 = vmatmul.mubr.msk.f32.vlgmr.msra.gmra.mrb[10].mxu0 %vm1504_vm2, %v1692_v52 }
 0xb7e   : > { %v1737_v54 = vpop.permute.xlu0 %1736 }
 0xc4b   : > { %v1808_v55 = vpop.f32.mrb[10].mxu0 }
 0xc4c   : > { %v1809_v56 = vadd.f32 %v1808_v55, %v1737_v54  ;;  %v2278_v57 = vpop.f32.mrb[11].mxu0 }
 0xc4e   : > { %v1813_v58 = vmul.f32 0.1, %v1809_v56  ;;  %vm1812_vm13 = vcmp.ge.f32.partialorder %v1809_v56, 0.0 }
 0xc50   : > { %v1814_v60 = vsel %vm1812_vm13, %v1809_v56, %v1813_v58 }
 0xc51   : > { %1816 = vrot.lane.b32.xlu1 %v1814_v60, %s3245_s28 }
 0xcc3   : > { %v1817_v61 = vpop.permute.xlu1 %1816 }
 0xcc4   : > { %v1819_v62 = vsel %vm1469_vm14, 0.0, %v1817_v61  ;;  %v1820_v63 = vsel %vm1469_vm14, %v1817_v61, 0.0 }
 0xcc5   : > { %v2522_v1 = vpack.i.bf16 %v1820_v63, %v1819_v62 }
 0xcc7   : > { %2523 = vrot.lane.b32.xlu1 %v2522_v1, %s3250_s0  ;;  %2518 = vrot.lane.b32.xlu0 %v2522_v1, %s3248_s26  ;;  %s2006_s0 = sshll.u32 %s620_s30, 3 }
 0xcc8   : > { %s622_s27 = scalar_lea.vmem [#allocation2], %s2006_s0 }
 0xcc9   : > { %s1943_s21 = sshll.u32 %s622_s27, 4  ;;  %s3118_s21 = int_to_ptr.vmem [resolvable:$true] %s1943_s21 }
 0xcca   : > { %s2532_s7 = scalar_lea.vmem %s3118_s21, 128 }
 0xccb   : > { %1841 = vrot.lane.b32.xlu1 %v1819_v62, %s3251_s25  ;;  %2528 = vrot.lane.b32.xlu0 %v2522_v1, %s3249_s5  ;;  %s1930_s5 = scalar_lea.sflag [#allocation3], %s620_s30  ;;  %p2533_p11 = scmp.ne.s32.totalorder %s3118_s21, %s2532_s7 }
 0xccd   : > { %p2534_p12 = pnand %p2533_p11, %p2757_p5 }
 0xccf   : > { %1385 = vperm.xlu1 %2450, %v1255_v2   ;;  %1843 = vrot.lane.b32.xlu0 %v1820_v63, %s3251_s25  ;;  %s2072_s25 = sshll.u32 %s2740_s2, 7  ;;  %p2535_p13 = pneg %p2534_p12 }
 0xcd0   : > { %s3116_s26 = scalar_lea.hbm %s3178_s20, %s2072_s25  ;;  %s2613_s2 = smov [#allocation2]  }
 0xcd1   : > { %s2536_s0 = sshll.u32 %s2613_s2, 4  ;;  %s2537_s0 = int_to_ptr.vmem [resolvable:$false] %s2536_s0 }
 0xcd2   : > { %s2538_s8 = scalar_lea.vmem %s2537_s0, 256  ;;  %p2539_p0 = scmp.lt.s32.totalorder %s3118_s21, %s2537_s0 }
 0xcd3   : > { %1849 = vperm.xlu0 %2456, %v1695_v3   ;;  %p2540_p1 = scmp.lt.s32.totalorder %s2538_s8, %s2532_s7 }
 0xcd5   : > { %p2541_p2 = por %p2540_p1, %p2539_p0 }
 0xcd7   : > { %p2542_p3 = pnand %p2541_p2, %p2535_p13 }
 0xd39   : > { %v2524_v4 = vpop.permute.xlu1 %2523  ;;  %v2519_v5 = vpop.permute.xlu0 %2518 }
 0xd3a   : > { %v2521_v6 = vunpack.i.h.bf16 %v2519_v5  ;;  %v2520_v7 = vunpack.i.l.bf16 %v2519_v5  ;;  %v2526_v25 = vunpack.i.h.bf16 %v2524_v4  ;;  %v2525_v8 = vunpack.i.l.bf16 %v2524_v4 }
 0xd3c   : > { %v1827_v9 = vsel %vm1061_vm12, %v2520_v7, %v2521_v6  ;;  %v1833_v15 = vsel %vm1068_vm0, %v2525_v8, %v2526_v25 }
 0xd3d   : > { %v2367_v10 = vpack.c.bf16 %v1827_v9, %v1817_v61  ;;  %v2529_v11 = vpop.permute.xlu0 %2528  ;;  %v1842_v20 = vpop.permute.xlu1 %1841 }
 0xd3e   : > { %v2531_v13 = vunpack.i.h.bf16 %v2529_v11  ;;  %v2530_v14 = vunpack.i.l.bf16 %v2529_v11 }
 0xd3f   : > { %2369 = vmatpush3.bf16.msk.msra.mxu1 %vm2993_vm5, %v2367_v10 }
 0xd40   : > { %v1839_v16 = vsel %vm1272_vm8, %v2530_v14, %v2531_v13  ;;  %2370 = vmatprep.subr.bf16.mxu1 %v2596_v0 }
 0xd41   : > { %v2371_v18 = vpack.c.bf16 %v1839_v16, %v1833_v15  ;;  %v1844_v19 = vpop.permute.xlu0 %1843 }
 0xd42   : > { %v1845_v27 = vsel %vm1496_vm11, %v1842_v20, %v1844_v19 }
 0xd43   : > { %2372 = vmatpush3.bf16.msra.mxu1 %v2371_v18 }
 0xd44   : > { %2287 = vmatprep.subr.mxu1 %v2600_v17 }
 0xd47   : > { %2288 = vmatpush3.msra.mxu1 %v1845_v27 }
 0xd48   : > { %2290 = vmatmul.mubr.msk.f32.vlgmr.msra.gmra.mrb[6].mxu1 %vm1504_vm2, %v1694_v21 }
 0xd4e   : > { %v1386_v22 = vpop.permute.xlu1 %1385 }
 0xd4f   : > { %v2373_v23 = vadd.f32 %v1386_v22, %v2962_v59 }
 0xd51   : > { %v2374_v0 = vadd.f32 %v2373_v23, %v3061_v29 }
 0xd52   : > { %v1850_v24 = vpop.permute.xlu0 %1849 }
 0xd53   : > { %v2375_v17 = vadd.f32 %v2374_v0, %v1850_v24 }
 0xe1b   : > { %v1921_v26 = vpop.f32.mrb[6].mxu1 }
 0xe1c   : > { %v2376_v28 = vadd.f32 %v2375_v17, %v1921_v26  ;;  %v2291_v30 = vpop.f32.mrb[7].mxu1 }
 0xe1e   : > { %v1927_v31 = vmul.f32 0.5, %v2376_v28 }
 0xe20   : > { %1928 = vst [vmem:[%s622_s27] sm:$0xff] %v1927_v31 }
 0xe21   : > { %2545 = shalt.err (!%p2542_p3)
}
 0xe22   : > { %s2546_s30 = scalar_lea.hbm %s3116_s26, 128  ;;  %s2550_s28 = scalar_lea.hbm %s3178_s20, 256 }
 0xe23   : > { %p2547_p4 = scmp.ne.s32.totalorder %s3116_s26, %s2546_s30  ;;  %p2551_p9 = scmp.lt.u32.totalorder %s3116_s26, %s3178_s20 }
 0xe24   : > { %p2552_p10 = scmp.lt.u32.totalorder %s2550_s28, %s2546_s30  ;;  %p2554_p12 = scmp.lt.u32.totalorder %s2546_s30, %s3116_s26 }
 0xe25   : > { %p2548_p7 = pnand %p2547_p4, %p2757_p5 }
 0xe26   : > { %p2553_p11 = por %p2552_p10, %p2551_p9 }
 0xe27   : > { %p2549_p8 = pneg %p2548_p7 }
 0xe28   : > { %p2555_p13 = por %p2554_p12, %p2553_p11 }
 0xe2a   : > { %p2556_p0 = pnand %p2555_p13, %p2549_p8 }
 0xe2c   : > { %2559 = shalt.err (!%p2556_p0)
}
 0xe2d   : > { %2379 = dma.vmem_to_hbm [thread:$0]  (%p2757_p5), %s3118_s21, 128, %s3116_s26, %s1930_s5  }
 0xe2e PF: > { %p2385_p1 = scmp.ge.s32.totalorder %s2594_s24, 2  ;;  %s1955_s7 = sand.u32 1, %s2582_s1  }
 0xe2f   : > { %s1956_s8 = scalar_lea.sflag [#allocation3], %s1955_s7 }
 0xe30   : > { %p2382_p2 = pnand %p2385_p1, %p2761_p6 }
 0xe32   : > { %2577 = dma.done.wait (!%p2382_p2), %s1956_s8, 128  }
 0xe33   : > { %2579 = vsyncadd (!%p2382_p2), %s1956_s8, 4294967168  ;;  %s3252_s0 = sld [smem:[#allocation5_spill]]  ;;  %p30_p3 = scmp.ge.s32.totalorder %s2744_s3, 4  }
 0xe34   : > { %s3253_s1 = smov %s2586_s22  ;;  %s3254_s22 = smov %s2590_s23 }
 0xe35   : > { %s3256_s24 = smov %s2744_s3  ;;  %32 = sbr.rel (!%p30_p3) target bundleno = 13 (0xd), region = 135 }
 0xe39   : > { %s3255_s23 = smov %s3252_s0 }
 0xe3c   :  { %1961 = vsyncpa [#allocation3], 1 }
 0xe3d   :  { %1963 = vsyncpa [#allocation3 + $0x1], 1 }

</bundles_post_ra>
